<compile_context>
chip_gen: v7x
topology: tpu7x:2x2x1
jax: 0.10.0
libtpu: 0.0.40
codegen_flags: <defaults>
</compile_context>

<pallas_src>
import functools

import jax
import jax.numpy as jnp
from jax.experimental import pallas as pl
from jax.experimental.pallas import tpu as pltpu


def _unimodal_kernel(x_ref, w_ref, b_ref, tinc_ref, tdec_ref, y_ref, *, n_out):
    x = x_ref[...]

    # Fused linear: one MXU pass with a 2*N-wide output, then stable softplus.
    z = jnp.dot(x, w_ref[...], preferred_element_type=jnp.float32) + b_ref[...]
    s = jnp.logaddexp(z, 0.0)                      # softplus(z) = log(1 + e^z)

    s1 = s[:, :n_out]                              # lin1 branch (increasing)
    s2 = s[:, n_out:]                              # lin2 branch (decreasing)

    # Monotonic transforms as matmuls against constant triangular matrices
    # (cumsum, /N, and the first/last-element subtraction are all folded in).
    inc = jnp.dot(s1, tinc_ref[...], preferred_element_type=jnp.float32)
    dec = jnp.dot(s2, tdec_ref[...], preferred_element_type=jnp.float32)

    y_ref[...] = (inc * dec).astype(y_ref.dtype)


def _pick_batch_tile(batch, target=512):
    """Largest multiple-of-8 divisor of `batch` that is <= target."""
    tb = min(target, batch)
    while tb > 8 and (batch % tb != 0 or tb % 8 != 0):
        tb -= 8
    if tb < 1 or batch % tb != 0:
        tb = batch
    return tb


def unimodal_forward(x, w1_t, b1, w2_t, b2, *, block_rows=512):
    """Pallas wrapper.

    x     : [B, F_in]   float32
    w1_t  : [F_in, N]   transposed lin1 weight
    b1    : [1, N]
    w2_t  : [F_in, N]   transposed lin2 weight
    b2    : [1, N]
    returns [B, N] float32
    """
    B, F_in = x.shape
    N = w1_t.shape[1]

    # Host-side fusion of the two linear layers: one MXU-filling matmul.
    w_fused = jnp.concatenate([w1_t, w2_t], axis=1)            # [F_in, 2N]
    b_fused = jnp.concatenate([b1, b2], axis=1)                # [1, 2N]

    # Constant monotonic-cumsum matrices (built once on host).
    k = jnp.arange(N)
    t_inc = (((k[:, None] <= k[None, :]) & (k[:, None] > 0))
             .astype(jnp.float32) / N)                         # [N, N]
    t_dec = ((k[:, None] > k[None, :]).astype(jnp.float32) / N)  # [N, N]

    TB = _pick_batch_tile(B, block_rows)
    grid = (B // TB,)

    kernel = functools.partial(_unimodal_kernel, n_out=N)

    cost = pl.CostEstimate(
        flops=2 * B * F_in * (2 * N) + 2 * (2 * B * N * N),
        transcendentals=2 * B * (2 * N),
        bytes_accessed=4 * (x.size + w_fused.size + b_fused.size
                            + t_inc.size + t_dec.size + B * N),
    )

    return pl.pallas_call(
        kernel,
        out_shape=jax.ShapeDtypeStruct((B, N), jnp.float32),
        grid=grid,
        in_specs=[
            pl.BlockSpec((TB, F_in), lambda i: (i, 0)),        # streamed x
            pl.BlockSpec((F_in, 2 * N), lambda i: (0, 0)),     # resident weights
            pl.BlockSpec((1, 2 * N), lambda i: (0, 0)),        # resident bias
            pl.BlockSpec((N, N), lambda i: (0, 0)),            # resident T_inc
            pl.BlockSpec((N, N), lambda i: (0, 0)),            # resident T_dec
        ],
        out_specs=pl.BlockSpec((TB, N), lambda i: (i, 0)),     # streamed y
        compiler_params=pltpu.CompilerParams(
            dimension_semantics=("parallel",)),
        cost_estimate=cost,
    )(x, w_fused, b_fused, t_inc, t_dec)


def unimodal_reference(x, w1_t, b1, w2_t, b2):
    """Pure-JAX reference mirroring the PyTorch forward."""
    N = w1_t.shape[1]
    c1 = jnp.cumsum(jax.nn.softplus(x @ w1_t + b1), axis=1) / N
    inc = c1 - c1[:, 0:1]
    c2 = jnp.cumsum(jax.nn.softplus(x @ w2_t + b2), axis=1) / N
    dec = -c2 + c2[:, -1:]
    return inc * dec


if __name__ == "__main__":
    B, F_in, F_out = 256, 32, 128

    key = jax.random.PRNGKey(0)
    kx, kw1, kb1, kw2, kb2 = jax.random.split(key, 5)

    # nn.Linear-style uniform init scale (deterministic synthetic params).
    bound = 1.0 / (F_in ** 0.5)
    x = jax.random.normal(kx, (B, F_in), dtype=jnp.float32)
    w1_t = jax.random.uniform(kw1, (F_in, F_out), jnp.float32, -bound, bound)
    b1 = jax.random.uniform(kb1, (1, F_out), jnp.float32, -bound, bound)
    w2_t = jax.random.uniform(kw2, (F_in, F_out), jnp.float32, -bound, bound)
    b2 = jax.random.uniform(kb2, (1, F_out), jnp.float32, -bound, bound)

    # block_rows=128 so the small demo still exercises a multi-step grid.
    y = unimodal_forward(x, w1_t, b1, w2_t, b2, block_rows=128)
    y = jax.block_until_ready(y)

    y_ref = unimodal_reference(x, w1_t, b1, w2_t, b2)
    assert y.shape == (B, F_out)
    assert jnp.allclose(y, y_ref, atol=1e-4, rtol=1e-4), "mismatch vs reference"

    print("KERNEL_OK")
</pallas_src>

<mosaic_0001>
module attributes {stable_mosaic.version = 11 : i64} {
  func.func @_unimodal_kernel(%arg0: i32, %arg1: memref<128x32xf32, #tpu.memory_space<vmem>>, %arg2: memref<32x256xf32, #tpu.memory_space<vmem>>, %arg3: memref<1x256xf32, #tpu.memory_space<vmem>>, %arg4: memref<128x128xf32, #tpu.memory_space<vmem>>, %arg5: memref<128x128xf32, #tpu.memory_space<vmem>>, %arg6: memref<128x128xf32, #tpu.memory_space<vmem>>) attributes {dimension_semantics = [#tpu.dimension_semantics<parallel>], iteration_bounds = array<i64: 2>, scalar_prefetch = 0 : i64, scratch_operands = 0 : i64, tpu.core_type = #tpu.core_type<tc>, window_params = [{transform_indices = @transform_0, window_bounds = array<i64: 128, 32>}, {pipeline_mode = #tpu.pipeline_mode<synchronous>, transform_indices = @transform_1, window_bounds = array<i64: 32, 256>}, {pipeline_mode = #tpu.pipeline_mode<synchronous>, transform_indices = @transform_2, window_bounds = array<i64: 1, 256>}, {pipeline_mode = #tpu.pipeline_mode<synchronous>, transform_indices = @transform_3, window_bounds = array<i64: 128, 128>}, {pipeline_mode = #tpu.pipeline_mode<synchronous>, transform_indices = @transform_4, window_bounds = array<i64: 128, 128>}, {transform_indices = @transform_5, window_bounds = array<i64: 128, 128>}]} {
    %c0 = arith.constant 0 : index
    %c0_0 = arith.constant 0 : index
    %0 = vector.load %arg1[%c0, %c0_0] : memref<128x32xf32, #tpu.memory_space<vmem>>, vector<128x32xf32>
    %c0_1 = arith.constant 0 : index
    %c0_2 = arith.constant 0 : index
    %1 = vector.load %arg2[%c0_1, %c0_2] : memref<32x256xf32, #tpu.memory_space<vmem>>, vector<32x256xf32>
    %cst = arith.constant dense<0.000000e+00> : vector<128x256xf32>
    %2 = tpu.matmul %0, %1, %cst {dimension_numbers = #tpu.dot_dimension_numbers<[1], [0], [0], [1], [0, 0, 1, 1], [], []>} : vector<128x32xf32>, vector<32x256xf32>, vector<128x256xf32> -> vector<128x256xf32>
    %c0_3 = arith.constant 0 : index
    %c0_4 = arith.constant 0 : index
    %3 = vector.load %arg3[%c0_3, %c0_4] : memref<1x256xf32, #tpu.memory_space<vmem>>, vector<1x256xf32>
    %4 = vector.broadcast %3 : vector<1x256xf32> to vector<128x256xf32>
    %5 = arith.addf %2, %4 : vector<128x256xf32>
    %cst_5 = arith.constant 0.000000e+00 : f32
    %6 = vector.broadcast %cst_5 : f32 to vector<128x256xf32>
    %7 = arith.maximumf %5, %6 : vector<128x256xf32>
    %8 = vector.broadcast %cst_5 : f32 to vector<128x256xf32>
    %9 = arith.subf %5, %8 : vector<128x256xf32>
    %10 = arith.cmpf one, %9, %9 : vector<128x256xf32>
    %11 = vector.broadcast %cst_5 : f32 to vector<128x256xf32>
    %12 = arith.addf %5, %11 : vector<128x256xf32>
    %13 = math.absf %9 : vector<128x256xf32>
    %cst_6 = arith.constant 0.000000e+00 : f32
    %14 = vector.broadcast %cst_6 : f32 to vector<128x256xf32>
    %15 = arith.subf %14, %13 : vector<128x256xf32>
    %16 = math.exp %15 : vector<128x256xf32>
    %17 = math.log1p %16 : vector<128x256xf32>
    %18 = arith.addf %7, %17 : vector<128x256xf32>
    %19 = arith.select %10, %12, %18 : vector<128x256xi1>, vector<128x256xf32>
    %20 = vector.extract_strided_slice %19 {offsets = [0, 0], sizes = [128, 128], strides = [1, 1]} : vector<128x256xf32> to vector<128x128xf32>
    %21 = vector.extract_strided_slice %19 {offsets = [0, 128], sizes = [128, 128], strides = [1, 1]} : vector<128x256xf32> to vector<128x128xf32>
    %c0_7 = arith.constant 0 : index
    %c0_8 = arith.constant 0 : index
    %22 = vector.load %arg4[%c0_7, %c0_8] : memref<128x128xf32, #tpu.memory_space<vmem>>, vector<128x128xf32>
    %cst_9 = arith.constant dense<0.000000e+00> : vector<128x128xf32>
    %23 = tpu.matmul %20, %22, %cst_9 {dimension_numbers = #tpu.dot_dimension_numbers<[1], [0], [0], [1], [0, 0, 1, 1], [], []>} : vector<128x128xf32>, vector<128x128xf32>, vector<128x128xf32> -> vector<128x128xf32>
    %c0_10 = arith.constant 0 : index
    %c0_11 = arith.constant 0 : index
    %24 = vector.load %arg5[%c0_10, %c0_11] : memref<128x128xf32, #tpu.memory_space<vmem>>, vector<128x128xf32>
    %cst_12 = arith.constant dense<0.000000e+00> : vector<128x128xf32>
    %25 = tpu.matmul %21, %24, %cst_12 {dimension_numbers = #tpu.dot_dimension_numbers<[1], [0], [0], [1], [0, 0, 1, 1], [], []>} : vector<128x128xf32>, vector<128x128xf32>, vector<128x128xf32> -> vector<128x128xf32>
    %26 = arith.mulf %23, %25 : vector<128x128xf32>
    %c0_13 = arith.constant 0 : index
    %c0_14 = arith.constant 0 : index
    %27 = vector.load %arg6[%c0_13, %c0_14] : memref<128x128xf32, #tpu.memory_space<vmem>>, vector<128x128xf32>
    tpu.vector_store %arg6[%c0_13, %c0_14], %26 {strides = array<i32>} : memref<128x128xf32, #tpu.memory_space<vmem>>, vector<128x128xf32>,
    return
  }
  func.func @transform_0(%arg0: i32) -> (i32, i32) {
    %c0_i32 = arith.constant 0 : i32
    %c0_i32_0 = arith.constant 0 : i32
    return %arg0, %c0_i32 : i32, i32
  }
  func.func @transform_1(%arg0: i32) -> (i32, i32) {
    %c0_i32 = arith.constant 0 : i32
    %c0_i32_0 = arith.constant 0 : i32
    %c0_i32_1 = arith.constant 0 : i32
    return %c0_i32, %c0_i32_0 : i32, i32
  }
  func.func @transform_2(%arg0: i32) -> (i32, i32) {
    %c0_i32 = arith.constant 0 : i32
    %c0_i32_0 = arith.constant 0 : i32
    %c0_i32_1 = arith.constant 0 : i32
    return %c0_i32, %c0_i32_0 : i32, i32
  }
  func.func @transform_3(%arg0: i32) -> (i32, i32) {
    %c0_i32 = arith.constant 0 : i32
    %c0_i32_0 = arith.constant 0 : i32
    %c0_i32_1 = arith.constant 0 : i32
    return %c0_i32, %c0_i32_0 : i32, i32
  }
  func.func @transform_4(%arg0: i32) -> (i32, i32) {
    %c0_i32 = arith.constant 0 : i32
    %c0_i32_0 = arith.constant 0 : i32
    %c0_i32_1 = arith.constant 0 : i32
    return %c0_i32, %c0_i32_0 : i32, i32
  }
  func.func @transform_5(%arg0: i32) -> (i32, i32) {
    %c0_i32 = arith.constant 0 : i32
    %c0_i32_0 = arith.constant 0 : i32
    return %arg0, %c0_i32 : i32, i32
  }
}

</mosaic_0001>

<bundles_post_ra>
// kernel: tpu_custom_call.1
= control target key start
LH: loop header
LB: loop body
LE: loop exit
PB: predicated region body
PF: predicated region fallthrough
CT: control target
= control target key end

     0   :  { %10 = vsyncpa [#allocation3], 0  ;;  %s2936_s0 = inlined_call_operand.vmem [shape: f32[256,32], index: 0, kind: input, shape index: {}]   ;;  %s2937_s1 = inlined_call_operand.vmem [shape: f32[32,256], index: 1, kind: input, shape index: {}]   ;;  %s2938_s2 = inlined_call_operand.vmem [shape: f32[1,256], index: 2, kind: input, shape index: {}]   ;;  %s2939_s3 = inlined_call_operand.vmem [shape: f32[128,128], index: 3, kind: input, shape index: {}]   ;;  %s2940_s4 = inlined_call_operand.vmem [shape: f32[128,128], index: 4, kind: input, shape index: {}]   ;;  %s2941_s5 = inlined_call_operand.hbm [shape: f32[256,128], index: 5, kind: output, shape index: {}]  }
   0x1   :  { %12 = vsyncpa [#allocation3 + $0x1], 0  ;;  %s2039_s18 = smov 0   ;;  %s2041_s19 = smov 0  }
   0x2   :  { %s2043_s20 = smov 0   ;;  %s2045_s21 = smov 0  }
   0x3 LB: > { %s2060_s22 = sadd.s32 4294967295, %s2003_s21   ;;  %s1478_s23 = sadd.s32 4294967294, %s2003_s21   ;;  %s2003_s21 = sphi %s2045_s21, %s2973_s21   ;;  %s1999_s20 = sphi %s2043_s20, %s2972_s20   ;;  %s1995_s19 = sphi %s2041_s19, %s2971_s19   ;;  %s1991_s18 = sphi %s2039_s18, %s2970_s18  }
   0x4   : > { %s2064_s24 = sadd.s32 1, %s2003_s21   ;;  %s135_s25 = sadd.s32 1, %s1999_s20 }
   0x5   : > { %s132_s26 = ssub.s32 %s2003_s21, %s2064_s24  ;;  %p145_p0 = scmp.ne.s32.totalorder %s1999_s20, %s1995_s19 }
   0x6   : > { %p133_p1 = scmp.eq.s32.totalorder %s132_s26, 0  ;;  %p146_p2 = scmp.eq.s32.totalorder %s2060_s22, 1 }
   0x7   : > { %p151_p3 = scmp.ne.s32.totalorder %s1995_s19, %s1991_s18  ;;  %p152_p4 = scmp.eq.s32.totalorder %s1478_s23, 1 }
   0x8   : > { %s2075_s27 = scalar_select %p133_p1, %s1999_s20, %s135_s25  }
   0x9   : > { %p2077_p5 = por %p146_p2, %p145_p0  ;;  %p2081_p6 = por %p152_p4, %p151_p3 }
   0xa   : > { %p1481_p7 = scmp.ge.s32.totalorder %s2003_s21, 1  ;;  %p191_p8 = scmp.lt.s32.totalorder %s2003_s21, 3 }
   0xc   : > { %p192_p9 = pnand %p1481_p7, %p191_p8 }
   0xe   : > { %195 = sbr.rel (%p192_p9) target bundleno = 632 (0x278), region = 40 }
  0x15   : > { %v243_v0 = vld [vmem:[%s2937_s1 + $0x8] sm:$0xff]  ;;  %v245_v1 = vld [vmem:[%s2937_s1 + $0x18] sm:$0xff]  ;;  %v242_v2 = vld [vmem:[%s2937_s1] sm:$0xff]  ;;  %s1483_s11 = sshll.u32 %s2060_s22, 4  ;;  %v2005_v7 = vmov 0.0   ;;  %vm262_vm0 = vcmask 261120  }
  0x16   : > { %v1683_v3 = vpack.c.bf16 %v245_v1, %v243_v0  ;;  %v244_v4 = vld [vmem:[%s2937_s1 + $0x10] sm:$0xff]  ;;  %v247_v5 = vld [vmem:[%s2937_s1 + $0x28] sm:$0xff]  ;;  %v249_v6 = vld [vmem:[%s2937_s1 + $0x38] sm:$0xff]  ;;  %375 = vmatprep.mubr.f32.mxu0 %v2005_v7  ;;  %p220_p10 = scmp.lt.s32.totalorder %s1483_s11, 31  ;;  %s216_s12 = sand.u32 1, %s1995_s19  }
  0x17   : > { %v1685_v8 = vpack.c.bf16 %v244_v4, %v242_v2  ;;  %v1687_v9 = vpack.c.bf16 %v249_v6, %v247_v5  ;;  %v246_v10 = vld [vmem:[%s2937_s1 + $0x20] sm:$0xff]  ;;  %v248_v11 = vld [vmem:[%s2937_s1 + $0x30] sm:$0xff]  ;;  %v1049_v30 = vld [vmem:[%s2939_s3 + $0x8] sm:$0xff]  ;;  %s1482_s13 = sshll.u32 %s216_s12, 7  ;;  %s1506_s15 = sshll.u32 %s2060_s22, 11 }
  0x18   : > { %1684 = vmatprep.subr.bf16.mxu0 %v1683_v3  ;;  %s2975_s11 = smov (!%p220_p10, %s1483_s11), 31  ;;  %v1689_v12 = vpack.c.bf16 %v248_v11, %v246_v10  ;;  %v1048_v29 = vld [vmem:[%s2939_s3] sm:$0xff]  ;;  %v1210_v33 = vld [vmem:[%s2940_s4 + $0x8] sm:$0xff]  ;;  %v1050_v35 = vld [vmem:[%s2939_s3 + $0x10] sm:$0xff]  ;;  %s2866_s14 = scalar_lea.vmem [#allocation2], %s1482_s13 }
  0x19   : > { %1686 = vmatpush1.bf16.msra.mxu0 %v1685_v8  ;;  %s1484_s6 = sshll.u32 %s2975_s11, 3  ;;  %v1691_v31 = vpack.c.bf16 %v1049_v30, %v1048_v29  ;;  %v1209_v32 = vld [vmem:[%s2940_s4] sm:$0xff]  ;;  %v1051_v36 = vld [vmem:[%s2939_s3 + $0x18] sm:$0xff]  ;;  %v1211_v38 = vld [vmem:[%s2940_s4 + $0x10] sm:$0xff]  ;;  %s1416_s16 = sshll.u32 %s2866_s14, 4  ;;  %s2889_s16 = int_to_ptr.vmem [resolvable:$true] %s1416_s16 }
  0x1a   : > { %1688 = vmatprep.subr.bf16.mxu0 %v1687_v9  ;;  %s2115_s9 = scalar_lea.vmem %s2936_s0, %s1484_s6  ;;  %v2161_v34 = vpack.c.bf16 %v1210_v33, %v1209_v32  ;;  %v1695_v37 = vpack.c.bf16 %v1051_v36, %v1050_v35  ;;  %v1212_v39 = vld [vmem:[%s2940_s4 + $0x18] sm:$0xff]  ;;  %v1052_v41 = vld [vmem:[%s2939_s3 + $0x20] sm:$0xff]  ;;  %v1053_v42 = vld [vmem:[%s2939_s3 + $0x28] sm:$0xff]  ;;  %s2887_s25 = scalar_lea.hbm %s2941_s5, %s1506_s15 }
  0x1b   : > { %v226_v13 = vld [vmem:[%s2115_s9] sm:$0xff]  ;;  %v227_v14 = vld [vmem:[%s2115_s9 + $0x8] sm:$0xff]  ;;  %v228_v15 = vld [vmem:[%s2115_s9 + $0x10] sm:$0xff]  ;;  %1692 = vmatprep.subr.bf16.mxu1 %v1691_v31  ;;  %v2177_v40 = vpack.c.bf16 %v1212_v39, %v1211_v38  ;;  %v1699_v43 = vpack.c.bf16 %v1053_v42, %v1052_v41  ;;  %s2895_s26 = scalar_lea.sflag [#allocation3], %s216_s12  ;;  %s1941_s22 = scalar_lea.vmem %s2889_s16, 2048 }
  0x1c   : > { %v229_v16 = vld [vmem:[%s2115_s9 + $0x18] sm:$0xff]  ;;  %v230_v17 = vld [vmem:[%s2115_s9 + $0x20] sm:$0xff]  ;;  %v231_v18 = vld [vmem:[%s2115_s9 + $0x28] sm:$0xff]  ;;  %1694 = vmatpush3.bf16.msra.mxu1 %v1691_v31  ;;  %p1942_p11 = scmp.ne.s32.totalorder %s2889_s16, %s1941_s22  ;;  %s2006_s30 = smov [#allocation2]  }
  0x1d   : > { %1690 = vmatpush1.bf16.msra.mxu0 %v1689_v12  ;;  %v232_v19 = vld [vmem:[%s2115_s9 + $0x30] sm:$0xff]  ;;  %v233_v20 = vld [vmem:[%s2115_s9 + $0x38] sm:$0xff]  ;;  %v234_v21 = vld [vmem:[%s2115_s9 + $0x40] sm:$0xff]  ;;  %1696 = vmatprep.subr.bf16.mxu1 %v1695_v37  ;;  %s1945_s6 = sshll.u32 %s2006_s30, 4  ;;  %s1946_s6 = int_to_ptr.vmem [resolvable:$false] %s1945_s6 }
  0x1e   : > { %v235_v22 = vld [vmem:[%s2115_s9 + $0x48] sm:$0xff]  ;;  %v236_v23 = vld [vmem:[%s2115_s9 + $0x50] sm:$0xff]  ;;  %v237_v24 = vld [vmem:[%s2115_s9 + $0x58] sm:$0xff]  ;;  %1724 = vmatprep.subr.bf16.mxu0 %v2161_v34  ;;  %p1943_p12 = pnand %p1942_p11, %p2077_p5  ;;  %s1947_s7 = scalar_lea.vmem %s1946_s6, 4096 }
  0x1f   : > { %v238_v25 = vld [vmem:[%s2115_s9 + $0x60] sm:$0xff]  ;;  %v239_v26 = vld [vmem:[%s2115_s9 + $0x68] sm:$0xff]  ;;  %v240_v27 = vld [vmem:[%s2115_s9 + $0x70] sm:$0xff]  ;;  %p1948_p0 = scmp.lt.s32.totalorder %s2889_s16, %s1946_s6  ;;  %p1949_p1 = scmp.lt.s32.totalorder %s1947_s7, %s1941_s22 }
  0x20   : > { %1485 = vmatmul.mubr.msk.f32.vlgmr.msra.gmra.mrb[0].mxu0 %vm262_vm0, %v226_v13  ;;  %v241_v28 = vld [vmem:[%s2115_s9 + $0x78] sm:$0xff]  ;;  %1698 = vmatpush3.bf16.msra.mxu1 %v1695_v37  ;;  %v1213_v44 = vld [vmem:[%s2940_s4 + $0x20] sm:$0xff]  ;;  %v1214_v45 = vld [vmem:[%s2940_s4 + $0x28] sm:$0xff]  ;;  %v252_v13 = vlaneseq  ;;  %p1944_p13 = pneg %p1943_p12 }
  0x21   : > { %381 = vmatprep.mubr.f32.mxu0 %v2005_v7  ;;  %1726 = vmatpush3.bf16.msra.mxu0 %v2161_v34  ;;  %v2193_v46 = vpack.c.bf16 %v1214_v45, %v1213_v44  ;;  %v1054_v47 = vld [vmem:[%s2939_s3 + $0x30] sm:$0xff]  ;;  %v1055_v48 = vld [vmem:[%s2939_s3 + $0x38] sm:$0xff]  ;;  %v1056_v53 = vld [vmem:[%s2939_s3 + $0x40] sm:$0xff]  ;;  %p1950_p2 = por %p1949_p1, %p1948_p0 }
  0x22   : > { %1728 = vmatprep.subr.bf16.mxu0 %v2177_v40  ;;  %1700 = vmatprep.subr.bf16.mxu1 %v1699_v43  ;;  %v1703_v49 = vpack.c.bf16 %v1055_v48, %v1054_v47  ;;  %v1215_v50 = vld [vmem:[%s2940_s4 + $0x30] sm:$0xff]  ;;  %v1216_v51 = vld [vmem:[%s2940_s4 + $0x38] sm:$0xff]  ;;  %v1057_v54 = vld [vmem:[%s2939_s3 + $0x48] sm:$0xff] }
  0x23   : > { %v2209_v52 = vpack.c.bf16 %v1216_v51, %v1215_v50  ;;  %v1707_v55 = vpack.c.bf16 %v1057_v54, %v1056_v53  ;;  %v1217_v56 = vld [vmem:[%s2940_s4 + $0x40] sm:$0xff]  ;;  %v1218_v57 = vld [vmem:[%s2940_s4 + $0x48] sm:$0xff]  ;;  %v1058_v59 = vld [vmem:[%s2939_s3 + $0x50] sm:$0xff]  ;;  %p1951_p3 = pnand %p1950_p2, %p1944_p13 }
  0x24   : > { %1486 = vmatmul.mubr.msk.f32.gmra.mrb[2].mxu0 %vm262_vm0, %v227_v14  ;;  %1702 = vmatpush3.bf16.msra.mxu1 %v1699_v43  ;;  %v2225_v58 = vpack.c.bf16 %v1218_v57, %v1217_v56  ;;  %v1059_v60 = vld [vmem:[%s2939_s3 + $0x58] sm:$0xff]  ;;  %v1219_v62 = vld [vmem:[%s2940_s4 + $0x50] sm:$0xff]  ;;  %v1060_v1 = vld [vmem:[%s2939_s3 + $0x60] sm:$0xff]  ;;  %v253_v14 = vshrl.u32 %v252_v13, 7 }
  0x25   : > { %387 = vmatprep.mubr.f32.mxu0 %v2005_v7  ;;  %1730 = vmatpush3.bf16.msra.mxu0 %v2177_v40  ;;  %v1711_v61 = vpack.c.bf16 %v1059_v60, %v1058_v59  ;;  %v1220_v63 = vld [vmem:[%s2940_s4 + $0x58] sm:$0xff]  ;;  %v1061_v2 = vld [vmem:[%s2939_s3 + $0x68] sm:$0xff]  ;;  %v1221_v4 = vld [vmem:[%s2940_s4 + $0x60] sm:$0xff] }
  0x26   : > { %1732 = vmatprep.subr.bf16.mxu0 %v2193_v46  ;;  %1704 = vmatprep.subr.bf16.mxu1 %v1703_v49  ;;  %v2241_v0 = vpack.c.bf16 %v1220_v63, %v1219_v62  ;;  %v1715_v3 = vpack.c.bf16 %v1061_v2, %v1060_v1  ;;  %v1222_v5 = vld [vmem:[%s2940_s4 + $0x68] sm:$0xff]  ;;  %v1063_v8 = vld [vmem:[%s2939_s3 + $0x78] sm:$0xff]  ;;  %v1223_v10 = vld [vmem:[%s2940_s4 + $0x70] sm:$0xff] }
  0x27   : > { %v2257_v6 = vpack.c.bf16 %v1222_v5, %v1221_v4  ;;  %v1224_v11 = vld [vmem:[%s2940_s4 + $0x78] sm:$0xff] }
  0x28   : > { %1487 = vmatmul.mubr.msk.f32.gmra.mrb[4].mxu0 %vm262_vm0, %v228_v15  ;;  %1706 = vmatpush3.bf16.msra.mxu1 %v1703_v49  ;;  %v2274_v12 = vpack.c.bf16 %v1224_v11, %v1223_v10  ;;  %v254_v15 = vsub.s32 0, %v253_v14 }
  0x29   : > { %393 = vmatprep.mubr.f32.mxu0 %v2005_v7  ;;  %1734 = vmatpush3.bf16.msra.mxu0 %v2193_v46 }
  0x2a   : > { %1736 = vmatprep.subr.bf16.mxu0 %v2209_v52  ;;  %1708 = vmatprep.subr.bf16.mxu1 %v1707_v55 }
  0x2c   : > { %1488 = vmatmul.mubr.msk.f32.gmra.mrb[6].mxu0 %vm262_vm0, %v229_v16  ;;  %1710 = vmatpush3.bf16.msra.mxu1 %v1707_v55  ;;  %v250_v16 = vld [vmem:[%s2938_s2] sm:$0x3] }
  0x2d   : > { %399 = vmatprep.mubr.f32.mxu0 %v2005_v7  ;;  %1738 = vmatpush3.bf16.msra.mxu0 %v2209_v52 }
  0x2e   : > { %1740 = vmatprep.subr.bf16.mxu0 %v2225_v58  ;;  %1712 = vmatprep.subr.bf16.mxu1 %v1711_v61 }
  0x30   : > { %1489 = vmatmul.mubr.msk.f32.gmra.mrb[8].mxu0 %vm262_vm0, %v230_v17  ;;  %1714 = vmatpush3.bf16.msra.mxu1 %v1711_v61  ;;  %v258_v17 = vsub.s32 1, %v253_v14 }
  0x31   : > { %405 = vmatprep.mubr.f32.mxu0 %v2005_v7  ;;  %1742 = vmatpush3.bf16.msra.mxu0 %v2225_v58 }
  0x32   : > { %1744 = vmatprep.subr.bf16.mxu0 %v2241_v0  ;;  %1716 = vmatprep.subr.bf16.mxu1 %v1715_v3 }
  0x34   : > { %1490 = vmatmul.mubr.msk.f32.gmra.mrb[10].mxu0 %vm262_vm0, %v231_v18  ;;  %1718 = vmatpush3.bf16.msra.mxu1 %v1715_v3  ;;  %v2281_v18 = vrot.slane %v250_v16, %v254_v15 }
  0x35   : > { %411 = vmatprep.mubr.f32.mxu0 %v2005_v7  ;;  %1746 = vmatpush3.bf16.msra.mxu0 %v2241_v0 }
  0x36   : > { %1748 = vmatprep.subr.bf16.mxu0 %v2257_v6 }
  0x38   : > { %1491 = vmatmul.mubr.msk.f32.gmra.mrb[12].mxu0 %vm262_vm0, %v232_v19  ;;  %v2283_v19 = vrot.slane %v250_v16, %v258_v17 }
  0x39   : > { %417 = vmatprep.mubr.f32.mxu0 %v2005_v7  ;;  %1750 = vmatpush3.bf16.msra.mxu0 %v2257_v6 }
  0x3a   : > { %1752 = vmatprep.subr.bf16.mxu0 %v2274_v12 }
  0x3c   : > { %1492 = vmatmul.mubr.msk.f32.gmra.mrb[14].mxu0 %vm262_vm0, %v233_v20 }
  0x3d   : > { %423 = vmatprep.mubr.f32.mxu0 %v2005_v7  ;;  %1754 = vmatpush3.bf16.msra.mxu0 %v2274_v12 }
  0x40   : > { %1493 = vmatmul.mubr.msk.f32.gmra.mrb[16].mxu0 %vm262_vm0, %v234_v21 }
  0x41   : > { %429 = vmatprep.mubr.f32.mxu0 %v2005_v7 }
  0x44   : > { %1494 = vmatmul.mubr.msk.f32.gmra.mrb[18].mxu0 %vm262_vm0, %v235_v22 }
  0x45   : > { %435 = vmatprep.mubr.f32.mxu0 %v2005_v7 }
  0x48   : > { %1495 = vmatmul.mubr.msk.f32.gmra.mrb[20].mxu0 %vm262_vm0, %v236_v23 }
  0x49   : > { %441 = vmatprep.mubr.f32.mxu0 %v2005_v7 }
  0x4c   : > { %1496 = vmatmul.mubr.msk.f32.gmra.mrb[22].mxu0 %vm262_vm0, %v237_v24 }
  0x4d   : > { %447 = vmatprep.mubr.f32.mxu0 %v2005_v7 }
  0x50   : > { %1497 = vmatmul.mubr.msk.f32.gmra.mrb[24].mxu0 %vm262_vm0, %v238_v25 }
  0x51   : > { %453 = vmatprep.mubr.f32.mxu0 %v2005_v7 }
  0x54   : > { %1498 = vmatmul.mubr.msk.f32.gmra.mrb[26].mxu0 %vm262_vm0, %v239_v26 }
  0x55   : > { %459 = vmatprep.mubr.f32.mxu0 %v2005_v7 }
  0x58   : > { %1499 = vmatmul.mubr.msk.f32.gmra.mrb[28].mxu0 %vm262_vm0, %v240_v27 }
  0x59   : > { %465 = vmatprep.mubr.f32.mxu0 %v2005_v7  ;;  %v1062_v7 = vld [vmem:[%s2939_s3 + $0x70] sm:$0xff] }
  0x5a   : > { %v1719_v9 = vpack.c.bf16 %v1063_v8, %v1062_v7 }
  0x5c   : > { %1500 = vmatmul.mubr.msk.f32.gmra.mrb[30].mxu0 %vm262_vm0, %v241_v28  ;;  %1720 = vmatprep.subr.bf16.mxu1 %v1719_v9 }
  0x5d   : > { %1722 = vmatpush3.bf16.msra.mxu1 %v1719_v9 }
  0x5e   : > { %1755 = vmatprep.subr.bf16.mxu1 %v2161_v34 }
  0xf3   : > { %v377_v20 = vpop.f32.mrb[0].mxu0 }
  0xf4   : > { %v2286_v21 = vadd.f32 %v377_v20, %v2281_v18  ;;  %v379_v22 = vpop.f32.mrb[1].mxu0 }
  0xf5   : > { %v2289_v23 = vadd.f32 %v379_v22, %v2283_v19 }
  0xf6   : > { %v568_v24 = vand.u32 2147483647, %v2286_v21  ;;  %vm504_vm1 = vcmp.ne.f32.partialorder %v2286_v21, %v2286_v21 }
  0xf7   : > { %v569_v25 = vand.u32 2147483647, %v2289_v23  ;;  %v383_v26 = vpop.f32.mrb[2].mxu0  ;;  %vm505_vm3 = vcmp.ne.f32.partialorder %v2289_v23, %v2289_v23 }
  0xf8   : > { %v600_v27 = vsub.f32 0.0, %v568_v24  ;;  %v2294_v28 = vadd.f32 %v383_v26, %v2281_v18  ;;  %v385_v29 = vpop.f32.mrb[3].mxu0 }
  0xf9   : > { %v601_v30 = vsub.f32 0.0, %v569_v25  ;;  %v2297_v31 = vadd.f32 %v385_v29, %v2283_v19 }
  0xfa   : > { %v632_v32 = vmul.f32 1.442695, %v600_v27  ;;  %v570_v33 = vand.u32 2147483647, %v2294_v28  ;;  %vm506_vm5 = vcmp.ne.f32.partialorder %v2294_v28, %v2294_v28 }
  0xfb   : > { %v634_v35 = vmul.f32 1.442695, %v601_v30  ;;  %v389_v36 = vpop.f32.mrb[4].mxu0  ;;  %v571_v41 = vand.u32 2147483647, %v2297_v31  ;;  %vm507_vm8 = vcmp.ne.f32.partialorder %v2297_v31, %v2297_v31 }
  0xfc   : > { %1813 = vpow2.f32 %v632_v32  ;;  %v602_v37 = vsub.f32 0.0, %v570_v33  ;;  %v2301_v38 = vadd.f32 %v389_v36, %v2281_v18  ;;  %v391_v39 = vpop.f32.mrb[5].mxu0 }
  0xfd   : > { %v2305_v42 = vadd.f32 %v391_v39, %v2283_v19  ;;  %1815 = vpow2.f32 %v634_v35  ;;  %v603_v49 = vsub.f32 0.0, %v571_v41  ;;  %v472_v39 = vmax.f32 %v2286_v21, 0.0 }
  0xfe   : > { %v636_v43 = vmul.f32 1.442695, %v602_v37  ;;  %v572_v45 = vand.u32 2147483647, %v2301_v38  ;;  %vm508_vm9 = vcmp.ne.f32.partialorder %v2301_v38, %v2301_v38 }
  0xff   : > { %v395_v44 = vpop.f32.mrb[6].mxu0  ;;  %v573_v50 = vand.u32 2147483647, %v2305_v42  ;;  %v638_v59 = vmul.f32 1.442695, %v603_v49  ;;  %vm509_vm10 = vcmp.ne.f32.partialorder %v2305_v42, %v2305_v42 }
 0x100   : > { %v2309_v47 = vadd.f32 %v395_v44, %v2281_v18  ;;  %v397_v48 = vpop.f32.mrb[7].mxu0  ;;  %1817 = vpow2.f32 %v636_v43  ;;  %v604_v55 = vsub.f32 0.0, %v572_v45 }
 0x101   : > { %v2313_v51 = vadd.f32 %v397_v48, %v2283_v19  ;;  %v605_v60 = vsub.f32 0.0, %v573_v50  ;;  %1819 = vpow2.f32 %v638_v59 }
 0x102   : > { %v574_v53 = vand.u32 2147483647, %v2309_v47  ;;  %v640_v7 = vmul.f32 1.442695, %v604_v55  ;;  %vm510_vm13 = vcmp.ne.f32.partialorder %v2309_v47, %v2309_v47 }
 0x103   : > { %v401_v54 = vpop.f32.mrb[8].mxu0  ;;  %v575_v61 = vand.u32 2147483647, %v2313_v51  ;;  %v642_v11 = vmul.f32 1.442695, %v605_v60  ;;  %vm511_vm15 = vcmp.ne.f32.partialorder %v2313_v51, %v2313_v51 }
 0x104   : > { %v2317_v56 = vadd.f32 %v401_v54, %v2281_v18  ;;  %v403_v57 = vpop.f32.mrb[9].mxu0  ;;  %v606_v1 = vsub.f32 0.0, %v574_v53 }
 0x105   : > { %v2321_v62 = vadd.f32 %v403_v57, %v2283_v19  ;;  %v607_v13 = vsub.f32 0.0, %v575_v61 }
 0x106   : > { %v2323_v63 = vpop.eup %1813  ;;  %v576_v2 = vand.u32 2147483647, %v2317_v56  ;;  %v644_v15 = vmul.f32 1.442695, %v606_v1  ;;  %vm512_vm0 = vcmp.ne.f32.partialorder %v2317_v56, %v2317_v56 }
 0x107   : > { %v407_v3 = vpop.f32.mrb[10].mxu0  ;;  %v696_v4 = vadd.f32 1.0, %v2323_v63  ;;  %v2327_v5 = vpop.eup %1815  ;;  %v577_v8 = vand.u32 2147483647, %v2321_v62  ;;  %v699_v24 = vmul.f32 -0.5, %v2323_v63 }
 0x108   : > { %v2331_v9 = vadd.f32 %v407_v3, %v2281_v18  ;;  %v409_v10 = vpop.f32.mrb[11].mxu0  ;;  %v608_v17 = vsub.f32 0.0, %v576_v2  ;;  %v705_v25 = vadd.f32 1.0, %v2327_v5  ;;  %v646_v32 = vmul.f32 1.442695, %v607_v13 }
 0x109   : > { %v2334_v14 = vadd.f32 %v409_v10, %v2283_v19  ;;  %1821 = vlog2.f32 %v696_v4  ;;  %v609_v27 = vsub.f32 0.0, %v577_v8  ;;  %v700_v44 = vadd.f32 1.0, %v699_v24 }
 0x10a   : > { %v578_v16 = vand.u32 2147483647, %v2331_v9  ;;  %v2340_v26 = vpop.eup %1817  ;;  %1823 = vpow2.f32 %v640_v7  ;;  %v648_v41 = vmul.f32 1.442695, %v608_v17  ;;  %v702_v53 = vand.u32 2147483647, %v2323_v63 }
 0x10b   : > { %v579_v20 = vand.u32 2147483647, %v2334_v14  ;;  %v413_v22 = vpop.f32.mrb[12].mxu0  ;;  %1825 = vpow2.f32 %v642_v11  ;;  %v714_v45 = vadd.f32 1.0, %v2340_v26  ;;  %v650_v48 = vmul.f32 1.442695, %v609_v27  ;;  %v2361_v2 = vpop.eup %1819 }
 0x10c   : > { %v2343_v29 = vadd.f32 %v413_v22, %v2281_v18  ;;  %v415_v30 = vpop.f32.mrb[13].mxu0  ;;  %v610_v33 = vsub.f32 0.0, %v578_v16  ;;  %1827 = vlog2.f32 %v705_v25  ;;  %v708_v54 = vmul.f32 -0.5, %v2327_v5 }
 0x10d   : > { %v2346_v35 = vadd.f32 %v415_v30, %v2283_v19  ;;  %v611_v36 = vsub.f32 0.0, %v579_v20  ;;  %1829 = vpow2.f32 %v644_v15  ;;  %v701_v4 = vmul.f32 %v2323_v63, %v700_v44 }
 0x10e   : > { %v580_v37 = vand.u32 2147483647, %v2343_v29  ;;  %1831 = vpow2.f32 %v646_v32  ;;  %v652_v55 = vmul.f32 1.442695, %v610_v33  ;;  %v473_v7 = vmax.f32 %v2289_v23, 0.0 }
 0x10f   : > { %v419_v43 = vpop.f32.mrb[14].mxu0  ;;  %v581_v59 = vand.u32 2147483647, %v2346_v35  ;;  %v654_v60 = vmul.f32 1.442695, %v611_v36  ;;  %1833 = vlog2.f32 %v714_v45  ;;  %v709_v15 = vadd.f32 1.0, %v708_v54 }
 0x110   : > { %v2352_v49 = vadd.f32 %v419_v43, %v2281_v18  ;;  %v421_v50 = vpop.f32.mrb[15].mxu0  ;;  %v612_v57 = vsub.f32 0.0, %v580_v37  ;;  %1835 = vpow2.f32 %v648_v41  ;;  %vm2370_vm2 = vcmp.lt.f32.partialorder %v702_v53, 0.0004427343 }
 0x111   : > { %v2359_v1 = vadd.f32 %v421_v50, %v2283_v19  ;;  %1837 = vpow2.f32 %v650_v48  ;;  %v613_v17 = vsub.f32 0.0, %v581_v59  ;;  %v711_v25 = vand.u32 2147483647, %v2327_v5 }
 0x112   : > { %v582_v61 = vand.u32 2147483647, %v2352_v49  ;;  %1839 = vpow2.f32 %v652_v55  ;;  %v656_v16 = vmul.f32 1.442695, %v612_v57  ;;  %v723_v37 = vadd.f32 1.0, %v2361_v2 }
 0x113   : > { %v425_v3 = vpop.f32.mrb[16].mxu0  ;;  %v1822_v8 = vpop.eup %1821  ;;  %1841 = vpow2.f32 %v654_v60  ;;  %v583_v24 = vand.u32 2147483647, %v2359_v1  ;;  %v710_v48 = vmul.f32 %v2327_v5, %v709_v15  ;;  %v717_v50 = vmul.f32 -0.5, %v2340_v26 }
 0x114   : > { %v2368_v10 = vadd.f32 %v425_v3, %v2281_v18  ;;  %v427_v11 = vpop.f32.mrb[17].mxu0  ;;  %v698_v20 = vmul.f32 0.6931472, %v1822_v8  ;;  %v2376_v63 = vpop.eup %1823  ;;  %v614_v22 = vsub.f32 0.0, %v582_v61  ;;  %1843 = vpow2.f32 %v656_v16 }
 0x115   : > { %v2380_v27 = vpop.eup %1825  ;;  %v2384_v32 = vadd.f32 %v427_v11, %v2283_v19  ;;  %v658_v54 = vmul.f32 1.442695, %v613_v17  ;;  %v615_v60 = vsub.f32 0.0, %v583_v24  ;;  %vm712_vm4 = vcmp.lt.f32.partialorder %v711_v25, 0.0004427343 }
 0x116   : > { %v584_v30 = vand.u32 2147483647, %v2368_v10  ;;  %v704_v36 = vsel %vm2370_vm2, %v701_v4, %v698_v20  ;;  %v1828_v41 = vpop.eup %1827  ;;  %v660_v59 = vmul.f32 1.442695, %v614_v22  ;;  %1845 = vlog2.f32 %v723_v37 }
 0x117   : > { %v431_v33 = vpop.f32.mrb[18].mxu0  ;;  %v984_v45 = vadd.f32 %v704_v36, %v472_v39  ;;  %v2394_v53 = vpop.eup %1829  ;;  %v707_v57 = vmul.f32 0.6931472, %v1828_v41  ;;  %v585_v3 = vand.u32 2147483647, %v2384_v32  ;;  %v718_v20 = vadd.f32 1.0, %v717_v50 }
 0x118   : > { %v2390_v43 = vadd.f32 %v431_v33, %v2281_v18  ;;  %v433_v44 = vpop.f32.mrb[19].mxu0  ;;  %v2403_v39 = vpop.eup %1831  ;;  %v616_v5 = vsub.f32 0.0, %v584_v30  ;;  %1847 = vpow2.f32 %v658_v54  ;;  %v474_v25 = vmax.f32 %v2294_v28, 0.0 }
 0x119   : > { %v2397_v55 = vadd.f32 %v433_v44, %v2283_v19  ;;  %v1016_v61 = vsel %vm504_vm1, %v2286_v21, %v984_v45  ;;  %v713_v8 = vsel %vm712_vm4, %v710_v48, %v707_v57  ;;  %v1834_v11 = vpop.eup %1833  ;;  %v662_v33 = vmul.f32 1.442695, %v615_v60 }
 0x11a   : > { %1603 = vmatprep.mubr.f32.mxu1 %v1016_v61  ;;  %v586_v13 = vand.u32 2147483647, %v2390_v43  ;;  %v985_v16 = vadd.f32 %v713_v8, %v473_v7  ;;  %v2410_v21 = vpop.eup %1835  ;;  %v716_v36 = vmul.f32 0.6931472, %v1834_v11  ;;  %v726_v37 = vmul.f32 -0.5, %v2361_v2 }
 0x11b   : > { %2954 = vst [vmem:[#allocation5_spill] sm:$0xff] %v2397_v55  ;;  %v437_v4 = vpop.f32.mrb[20].mxu0  ;;  %v587_v22 = vand.u32 2147483647, %v2397_v55  ;;  %v2417_v30 = vpop.eup %1837  ;;  %1849 = vpow2.f32 %v660_v59  ;;  %v617_v44 = vsub.f32 0.0, %v585_v3  ;;  %v475_v8 = vmax.f32 %v2297_v31, 0.0 }
 0x11c   : > { %v2408_v15 = vadd.f32 %v437_v4, %v2281_v18  ;;  %v439_v17 = vpop.f32.mrb[21].mxu0  ;;  %v1017_v7 = vsel %vm505_vm3, %v2289_v23, %v985_v16  ;;  %v2424_v41 = vpop.eup %1839  ;;  %v720_v45 = vand.u32 2147483647, %v2340_v26  ;;  %v664_v50 = vmul.f32 1.442695, %v616_v5 }
 0x11d   : > { %v2414_v24 = vadd.f32 %v439_v17, %v2283_v19  ;;  %1659 = vmatprep.mubr.f32.mxu0 %v1017_v7  ;;  %v2429_v48 = vpop.eup %1841  ;;  %v618_v54 = vsub.f32 0.0, %v586_v13  ;;  %v719_v23 = vmul.f32 %v2340_v26, %v718_v20  ;;  %v619_v61 = vsub.f32 0.0, %v587_v22 }
 0x11e   : > { %v588_v57 = vand.u32 2147483647, %v2408_v15  ;;  %vm721_vm6 = vcmp.lt.f32.partialorder %v720_v45, 0.0004427343  ;;  %1851 = vpow2.f32 %v662_v33  ;;  %v727_v16 = vadd.f32 1.0, %v726_v37  ;;  %v2438_v5 = vpop.eup %1843 }
 0x11f   : > { %2955 = vst [vmem:[#allocation6_spill] sm:$0xff] %v2414_v24  ;;  %v443_v60 = vpop.f32.mrb[22].mxu0  ;;  %v589_v4 = vand.u32 2147483647, %v2414_v24  ;;  %v722_v11 = vsel %vm721_vm6, %v719_v23, %v716_v36  ;;  %v729_v26 = vand.u32 2147483647, %v2361_v2  ;;  %1853 = vpow2.f32 %v664_v50 }
 0x120   : > { %v2435_v59 = vadd.f32 %v443_v60, %v2281_v18  ;;  %v445_v3 = vpop.f32.mrb[23].mxu0  ;;  %v986_v13 = vadd.f32 %v722_v11, %v474_v25  ;;  %v666_v7 = vmul.f32 1.442695, %v617_v44  ;;  %v620_v45 = vsub.f32 0.0, %v588_v57  ;;  %v1846_v33 = vpop.eup %1845 }
 0x121   : > { %v2443_v20 = vadd.f32 %v445_v3, %v2283_v19  ;;  %v732_v60 = vadd.f32 1.0, %v2376_v63  ;;  %v668_v36 = vmul.f32 1.442695, %v618_v54  ;;  %v670_v37 = vmul.f32 1.442695, %v619_v61 }
 0x122   : > { %v590_v17 = vand.u32 2147483647, %v2435_v59  ;;  %v621_v23 = vsub.f32 0.0, %v589_v4  ;;  %v1018_v25 = vsel %vm506_vm5, %v2294_v28, %v986_v13  ;;  %v725_v11 = vmul.f32 0.6931472, %v1846_v33  ;;  %v2452_v44 = vpop.eup %1847 }
 0x123   : > { %2956 = vst [vmem:[#allocation7_spill] sm:$0xff] %v2443_v20  ;;  %v449_v22 = vpop.f32.mrb[24].mxu0  ;;  %1604 = vmatmul.mubr.f32.vlgmr.msra.gmra.mrb[0].mxu1 %v1018_v25  ;;  %v728_v3 = vmul.f32 %v2361_v2, %v727_v16  ;;  %v591_v50 = vand.u32 2147483647, %v2443_v20  ;;  %1855 = vlog2.f32 %v732_v60  ;;  %vm730_vm7 = vcmp.lt.f32.partialorder %v729_v26, 0.0004427343 }
 0x124   : > { %v451_v24 = vpop.f32.mrb[25].mxu0  ;;  %v622_v57 = vsub.f32 0.0, %v590_v17  ;;  %v2455_v54 = vadd.f32 %v449_v22, %v2281_v18  ;;  %v741_v61 = vadd.f32 1.0, %v2380_v27  ;;  %1763 = vmatpush3.bf16.msra.mxu1 %v2161_v34  ;;  %1857 = vpow2.f32 %v666_v7 }
 0x125   : > { %v672_v28 = vmul.f32 1.442695, %v620_v45  ;;  %v731_v13 = vsel %vm730_vm7, %v728_v3, %v725_v11  ;;  %v735_v2 = vmul.f32 -0.5, %v2376_v63  ;;  %1756 = vmatprep.subr.bf16.mxu1 %v2177_v40  ;;  %v2465_v17 = vpop.eup %1849  ;;  %1859 = vpow2.f32 %v668_v36 }
 0x126   : > { %v987_v26 = vadd.f32 %v731_v13, %v475_v8  ;;  %v476_v22 = vmax.f32 %v2301_v38, 0.0  ;;  %v674_v60 = vmul.f32 1.442695, %v621_v23  ;;  %v623_v34 = vsub.f32 0.0, %v591_v50 }
 0x127   : > { %v2458_v4 = vpop.f32.mrb[26].mxu0  ;;  %v592_v7 = vand.u32 2147483647, %v2455_v54  ;;  %1861 = vlog2.f32 %v741_v61  ;;  %v676_v45 = vmul.f32 1.442695, %v622_v57  ;;  %v750_v25 = vadd.f32 1.0, %v2394_v53 }
 0x128   : > { %v2462_v16 = vpop.f32.mrb[27].mxu0  ;;  %1863 = vpow2.f32 %v670_v37  ;;  %v1019_v33 = vsel %vm507_vm8, %v2297_v31, %v987_v26  ;;  %1764 = vmatpush3.bf16.msra.mxu1 %v2177_v40  ;;  %v2476_v36 = vpop.eup %1851  ;;  %v736_v8 = vadd.f32 1.0, %v735_v2  ;;  %v744_v3 = vmul.f32 -0.5, %v2380_v27 }
 0x129   : > { %1865 = vpow2.f32 %v672_v28  ;;  %1660 = vmatmul.mubr.f32.vlgmr.msra.gmra.mrb[32].mxu0 %v1019_v33  ;;  %1757 = vmatprep.subr.bf16.mxu1 %v2193_v46  ;;  %v2486_v31 = vadd.f32 %v451_v24, %v2283_v19  ;;  %v759_v37 = vadd.f32 1.0, %v2403_v39  ;;  %v2490_v57 = vpop.eup %1853  ;;  %v678_v61 = vmul.f32 1.442695, %v623_v34 }
 0x12a   : > { %1867 = vlog2.f32 %v750_v25  ;;  %v738_v28 = vand.u32 2147483647, %v2376_v63  ;;  %v624_v13 = vsub.f32 0.0, %v592_v7  ;;  %v747_v2 = vand.u32 2147483647, %v2380_v27 }
 0x12b   : > { %v2473_v11 = vpop.f32.mrb[28].mxu0  ;;  %2957 = vst [vmem:[#allocation8_spill] sm:$0xff] %v2486_v31  ;;  %1869 = vpow2.f32 %v674_v60  ;;  %v737_v40 = vmul.f32 %v2376_v63, %v736_v8  ;;  %v745_v23 = vadd.f32 1.0, %v744_v3  ;;  %v753_v60 = vmul.f32 -0.5, %v2394_v53 }
 0x12c   : > { %v2480_v50 = vpop.f32.mrb[29].mxu0  ;;  %1871 = vpow2.f32 %v676_v45  ;;  %1765 = vmatpush3.bf16.msra.mxu1 %v2193_v46  ;;  %v593_v45 = vand.u32 2147483647, %v2486_v31  ;;  %v762_v24 = vmul.f32 -0.5, %v2403_v39  ;;  %v768_v46 = vadd.f32 1.0, %v2410_v21 }
 0x12d   : > { %v1856_v25 = vpop.eup %1855  ;;  %1873 = vlog2.f32 %v759_v37  ;;  %1758 = vmatprep.subr.bf16.mxu1 %v2209_v52  ;;  %vm739_vm11 = vcmp.lt.f32.partialorder %v738_v28, 0.0004427343  ;;  %v680_v63 = vmul.f32 1.442695, %v624_v13  ;;  %v756_v8 = vand.u32 2147483647, %v2394_v53 }
 0x12e   : > { %v734_v7 = vmul.f32 0.6931472, %v1856_v25  ;;  %v2509_v26 = vpop.eup %1857  ;;  %1875 = vpow2.f32 %v678_v61  ;;  %vm2514_vm12 = vcmp.lt.f32.partialorder %v747_v2, 0.0004427343  ;;  %v2520_v31 = vadd.f32 %v2458_v4, %v2281_v18 }
 0x12f   : > { %v2496_v33 = vpop.f32.mrb[30].mxu0  ;;  %v2512_v3 = vpop.eup %1859  ;;  %1877 = vlog2.f32 %v768_v46  ;;  %v746_v28 = vmul.f32 %v2380_v27, %v745_v23  ;;  %v754_v13 = vadd.f32 1.0, %v753_v60  ;;  %v763_v46 = vadd.f32 1.0, %v762_v24 }
 0x130   : > { %v2501_v34 = vpop.f32.mrb[31].mxu0  ;;  %v740_v37 = vsel %vm739_vm11, %v737_v40, %v734_v7  ;;  %1766 = vmatpush3.bf16.msra.mxu1 %v2209_v52  ;;  %v2528_v40 = vadd.f32 %v2462_v16, %v2283_v19  ;;  %v625_v7 = vsub.f32 0.0, %v593_v45  ;;  %v771_v52 = vmul.f32 -0.5, %v2410_v21 }
 0x131   : > { %v1862_v20 = vpop.eup %1861  ;;  %v988_v61 = vadd.f32 %v740_v37, %v476_v22  ;;  %1759 = vmatprep.subr.bf16.mxu1 %v2225_v58  ;;  %1879 = vpow2.f32 %v680_v63  ;;  %vm2540_vm14 = vcmp.lt.f32.partialorder %v756_v8, 0.0004427343  ;;  %v2546_v23 = vadd.f32 %v2473_v11, %v2281_v18 }
 0x132   : > { %v2531_v2 = vpop.eup %1863  ;;  %v743_v4 = vmul.f32 0.6931472, %v1862_v20  ;;  %v594_v60 = vand.u32 2147483647, %v2520_v31  ;;  %v777_v45 = vadd.f32 1.0, %v2417_v30  ;;  %v2962_v11 = vmax.f32 %v2305_v42, 0.0 }
 0x133   : > { %v2534_v22 = vpop.eup %1865  ;;  %v1020_v27 = vsel %vm508_vm9, %v2301_v38, %v988_v61  ;;  %v765_v38 = vand.u32 2147483647, %v2403_v39  ;;  %v755_v25 = vmul.f32 %v2394_v53, %v754_v13  ;;  %v595_v61 = vand.u32 2147483647, %v2528_v40 }
 0x134   : > { %v1868_v20 = vpop.eup %1867  ;;  %1606 = vmatprep.mubr.f32.mxu1 %v1020_v27  ;;  %v749_v24 = vsel %vm2514_vm12, %v746_v28, %v743_v4  ;;  %1767 = vmatpush3.bf16.msra.mxu1 %v2225_v58  ;;  %v682_v4 = vmul.f32 1.442695, %v625_v7  ;;  %v764_v27 = vmul.f32 %v2403_v39, %v763_v46  ;;  %v772_v55 = vadd.f32 1.0, %v771_v52 }
 0x135   : > { %v2556_v63 = vpop.eup %1869  ;;  %v989_v8 = vadd.f32 %v749_v24, %v2962_v11  ;;  %v752_v37 = vmul.f32 0.6931472, %v1868_v20  ;;  %1760 = vmatprep.subr.bf16.mxu1 %v2241_v0  ;;  %1881 = vlog2.f32 %v777_v45  ;;  %v774_v13 = vand.u32 2147483647, %v2410_v21 }
 0x136   : > { %v2563_v28 = vpop.eup %1871  ;;  %v596_v7 = vand.u32 2147483647, %v2546_v23  ;;  %v2963_v39 = vmax.f32 %v2309_v47, 0.0  ;;  %v780_v20 = vmul.f32 -0.5, %v2417_v30  ;;  %v626_v45 = vsub.f32 0.0, %v594_v60 }
 0x137   : > { %v1874_v58 = vpop.eup %1873  ;;  %v1021_v24 = vsel %vm509_vm10, %v2305_v42, %v989_v8  ;;  %v758_v53 = vsel %vm2540_vm14, %v755_v25, %v752_v37  ;;  %v2581_v42 = vadd.f32 %v2480_v50, %v2283_v19  ;;  %vm766_vm1 = vcmp.lt.f32.partialorder %v765_v38, 0.0004427343 }
 0x138   : > { %1662 = vmatprep.mubr.f32.mxu0 %v1021_v24  ;;  %v990_v46 = vadd.f32 %v758_v53, %v2963_v39  ;;  %v761_v52 = vmul.f32 0.6931472, %v1874_v58  ;;  %1768 = vmatpush3.bf16.msra.mxu1 %v2241_v0  ;;  %v2584_v16 = vpop.eup %1875  ;;  %v627_v11 = vsub.f32 0.0, %v595_v61  ;;  %v786_v8 = vadd.f32 1.0, %v2424_v41 }
 0x139   : > { %1761 = vmatprep.subr.bf16.mxu1 %v2257_v6  ;;  %v1878_v37 = vpop.eup %1877  ;;  %v773_v50 = vmul.f32 %v2410_v21, %v772_v55  ;;  %v2595_v0 = vadd.f32 %v2496_v33, %v2281_v18  ;;  %v2964_v60 = vmax.f32 %v2313_v51, 0.0  ;;  %v628_v24 = vsub.f32 0.0, %v596_v7 }
 0x13a   : > { %v1022_v25 = vsel %vm510_vm13, %v2309_v47, %v990_v46  ;;  %v767_v58 = vsel %vm766_vm1, %v764_v27, %v761_v52  ;;  %v770_v61 = vmul.f32 0.6931472, %v1878_v37  ;;  %1883 = vlog2.f32 %v786_v8 }
 0x13b   : > { %1607 = vmatmul.mubr.f32.gmra.mrb[2].mxu1 %v1022_v25  ;;  %v991_v38 = vadd.f32 %v767_v58, %v2964_v60  ;;  %vm775_vm2 = vcmp.lt.f32.partialorder %v774_v13, 0.0004427343  ;;  %v781_v53 = vadd.f32 1.0, %v780_v20  ;;  %v597_v39 = vand.u32 2147483647, %v2581_v42  ;;  %v2605_v55 = vpop.eup %1879 }
 0x13c   : > { %v2602_v47 = vadd.f32 %v2501_v34, %v2283_v19  ;;  %1769 = vmatpush3.bf16.msra.mxu1 %v2257_v6  ;;  %v776_v21 = vsel %vm775_vm2, %v773_v50, %v770_v61  ;;  %vm513_vm3 = vcmp.ne.f32.partialorder %v2321_v62, %v2321_v62  ;;  %v789_v33 = vmul.f32 -0.5, %v2424_v41 }
 0x13d   : > { %v1023_v18 = vsel %vm511_vm15, %v2313_v51, %v991_v38  ;;  %v598_v27 = vand.u32 2147483647, %v2595_v0  ;;  %1762 = vmatprep.subr.bf16.mxu1 %v2274_v12  ;;  %v684_v19 = vmul.f32 1.442695, %v626_v45  ;;  %v2965_v6 = vmax.f32 %v2317_v56, 0.0 }
 0x13e   : > { %1663 = vmatmul.mubr.f32.gmra.mrb[34].mxu0 %v1023_v18  ;;  %v783_v13 = vand.u32 2147483647, %v2417_v30  ;;  %v795_v7 = vadd.f32 1.0, %v2429_v48  ;;  %1885 = vpow2.f32 %v682_v4  ;;  %v686_v51 = vmul.f32 1.442695, %v627_v11 }
 0x13f   : > { %v992_v34 = vadd.f32 %v776_v21, %v2965_v6  ;;  %v688_v46 = vmul.f32 1.442695, %v628_v24  ;;  %v599_v52 = vand.u32 2147483647, %v2602_v47  ;;  %v1882_v20 = vpop.eup %1881  ;;  %v629_v45 = vsub.f32 0.0, %v597_v39 }
 0x140   : > { %1887 = vlog2.f32 %v795_v7  ;;  %v804_v37 = vadd.f32 1.0, %v2438_v5  ;;  %1770 = vmatpush3.bf16.msra.mxu1 %v2274_v12  ;;  %v779_v25 = vmul.f32 0.6931472, %v1882_v20  ;;  %v782_v4 = vmul.f32 %v2417_v30, %v781_v53 }
 0x141   : > { %v1024_v8 = vsel %vm512_vm0, %v2317_v56, %v992_v34  ;;  %v790_v11 = vadd.f32 1.0, %v789_v33  ;;  %v630_v58 = vsub.f32 0.0, %v598_v27  ;;  %1889 = vpow2.f32 %v684_v19 }
 0x142   : > { %1609 = vmatprep.mubr.f32.mxu1 %v1024_v8  ;;  %v481_v50 = vmax.f32 %v2321_v62, 0.0  ;;  %vm784_vm4 = vcmp.lt.f32.partialorder %v783_v13, 0.0004427343  ;;  %vm514_vm5 = vcmp.ne.f32.partialorder %v2331_v9, %v2331_v9  ;;  %v792_v56 = vand.u32 2147483647, %v2424_v41 }
 0x143   : > { %v785_v60 = vsel %vm784_vm4, %v782_v4, %v779_v25  ;;  %v798_v38 = vmul.f32 -0.5, %v2429_v48  ;;  %v631_v61 = vsub.f32 0.0, %v599_v52  ;;  %1891 = vlog2.f32 %v804_v37 }
 0x144   : > { %1893 = vpow2.f32 %v686_v51  ;;  %v993_v12 = vadd.f32 %v785_v60, %v481_v50  ;;  %v690_v24 = vmul.f32 1.442695, %v629_v45  ;;  %v822_v30 = vadd.f32 1.0, %v2465_v17  ;;  %v1884_v53 = vpop.eup %1883 }
 0x145   : > { %1895 = vpow2.f32 %v688_v46  ;;  %v482_v39 = vmax.f32 %v2331_v9, 0.0  ;;  %v791_v18 = vmul.f32 %v2424_v41, %v790_v11  ;;  %v692_v21 = vmul.f32 1.442695, %v630_v58 }
 0x146   : > { %v1025_v33 = vsel %vm513_vm3, %v2321_v62, %v993_v12  ;;  %v788_v27 = vmul.f32 0.6931472, %v1884_v53  ;;  %v807_v19 = vmul.f32 -0.5, %v2438_v5  ;;  %1897 = vlog2.f32 %v822_v30 }
 0x147   : > { %1665 = vmatprep.mubr.f32.mxu0 %v1025_v33  ;;  %vm793_vm6 = vcmp.lt.f32.partialorder %v792_v56, 0.0004427343  ;;  %vm515_vm7 = vcmp.ne.f32.partialorder %v2334_v14, %v2334_v14  ;;  %v799_v6 = vadd.f32 1.0, %v798_v38  ;;  %v694_v34 = vmul.f32 1.442695, %v631_v61 }
 0x148   : > { %v840_v13 = vadd.f32 1.0, %v2490_v57  ;;  %v487_v41 = vmax.f32 %v2359_v1, 0.0  ;;  %1899 = vpow2.f32 %v690_v24  ;;  %v794_v7 = vsel %vm793_vm6, %v791_v18, %v788_v27  ;;  %v2646_v62 = vpop.eup %1885 }
 0x149   : > { %v801_v51 = vand.u32 2147483647, %v2429_v48  ;;  %v994_v46 = vadd.f32 %v794_v7, %v482_v39  ;;  %v483_v52 = vmax.f32 %v2334_v14, 0.0  ;;  %v825_v20 = vmul.f32 -0.5, %v2465_v17 }
 0x14a   : > { %1901 = vlog2.f32 %v840_v13  ;;  %v1888_v8 = vpop.eup %1887  ;;  %vm516_vm8 = vcmp.ne.f32.partialorder %v2343_v29, %v2343_v29  ;;  %v808_v45 = vadd.f32 1.0, %v807_v19  ;;  %v810_v37 = vand.u32 2147483647, %v2438_v5 }
 0x14b   : > { %1903 = vpow2.f32 %v692_v21  ;;  %v858_v25 = vadd.f32 1.0, %v2512_v3  ;;  %v1026_v4 = vsel %vm514_vm5, %v2331_v9, %v994_v46  ;;  %v797_v11 = vmul.f32 0.6931472, %v1888_v8  ;;  %v2659_v50 = vpop.eup %1889 }
 0x14c   : > { %v800_v58 = vmul.f32 %v2429_v48, %v799_v6  ;;  %1905 = vpow2.f32 %v694_v34  ;;  %1610 = vmatmul.mubr.f32.gmra.mrb[4].mxu1 %v1026_v4  ;;  %vm802_vm9 = vcmp.lt.f32.partialorder %v801_v51, 0.0004427343  ;;  %v484_v56 = vmax.f32 %v2343_v29, 0.0 }
 0x14d   : > { %v843_v60 = vmul.f32 -0.5, %v2490_v57  ;;  %1907 = vlog2.f32 %v858_v25  ;;  %v1892_v38 = vpop.eup %1891  ;;  %vm518_vm10 = vcmp.ne.f32.partialorder %v2352_v49, %v2352_v49  ;;  %v826_v12 = vadd.f32 1.0, %v825_v20 }
 0x14e   : > { %v803_v61 = vsel %vm802_vm9, %v800_v58, %v797_v11  ;;  %v861_v9 = vmul.f32 -0.5, %v2512_v3  ;;  %v876_v48 = vadd.f32 1.0, %v2534_v22  ;;  %v2667_v24 = vpop.eup %1893  ;;  %v806_v53 = vmul.f32 0.6931472, %v1892_v38 }
 0x14f   : > { %v995_v30 = vadd.f32 %v803_v61, %v483_v52  ;;  %v809_v39 = vmul.f32 %v2438_v5, %v808_v45  ;;  %v828_v18 = vand.u32 2147483647, %v2465_v17  ;;  %v2671_v21 = vpop.eup %1895  ;;  %vm811_vm11 = vcmp.lt.f32.partialorder %v810_v37, 0.0004427343 }
 0x150   : > { %v486_v33 = vmax.f32 %v2352_v49, 0.0  ;;  %v846_v27 = vand.u32 2147483647, %v2490_v57  ;;  %1909 = vlog2.f32 %v876_v48  ;;  %v1898_v19 = vpop.eup %1897  ;;  %v844_v13 = vadd.f32 1.0, %v843_v60 }
 0x151   : > { %v1027_v6 = vsel %vm515_vm7, %v2334_v14, %v995_v30  ;;  %v812_v34 = vsel %vm811_vm11, %v809_v39, %v806_v53  ;;  %v894_v5 = vadd.f32 1.0, %v2563_v28  ;;  %v824_v51 = vmul.f32 0.6931472, %v1898_v19 }
 0x152   : > { %1666 = vmatmul.mubr.f32.gmra.mrb[36].mxu0 %v1027_v6  ;;  %v996_v7 = vadd.f32 %v812_v34, %v484_v56  ;;  %v827_v46 = vmul.f32 %v2465_v17, %v826_v12  ;;  %v862_v52 = vadd.f32 1.0, %v861_v9  ;;  %v2681_v20 = vpop.eup %1899  ;;  %vm829_vm12 = vcmp.lt.f32.partialorder %v828_v18, 0.0004427343 }
 0x153   : > { %v488_v8 = vmax.f32 %v2368_v10, 0.0  ;;  %v879_v45 = vmul.f32 -0.5, %v2534_v22  ;;  %1911 = vlog2.f32 %v894_v5  ;;  %v864_v4 = vand.u32 2147483647, %v2512_v3 }
 0x154   : > { %v1902_v37 = vpop.eup %1901  ;;  %v1028_v14 = vsel %vm516_vm8, %v2343_v29, %v996_v7  ;;  %v830_v25 = vsel %vm829_vm12, %v827_v46, %v824_v51  ;;  %v912_v17 = vadd.f32 1.0, %v2605_v55  ;;  %v845_v60 = vmul.f32 %v2490_v57, %v844_v13 }
 0x155   : > { %v2691_v11 = vpop.eup %1903  ;;  %1612 = vmatprep.mubr.f32.mxu1 %v1028_v14  ;;  %v998_v58 = vadd.f32 %v830_v25, %v486_v33  ;;  %v842_v56 = vmul.f32 0.6931472, %v1902_v37  ;;  %v897_v38 = vmul.f32 -0.5, %v2563_v28  ;;  %vm520_vm13 = vcmp.ne.f32.partialorder %v2368_v10, %v2368_v10 }
 0x156   : > { %v2695_v61 = vpop.eup %1905  ;;  %vm847_vm14 = vcmp.lt.f32.partialorder %v846_v27, 0.0004427343  ;;  %v863_v29 = vmul.f32 %v2512_v3, %v862_v52  ;;  %1913 = vlog2.f32 %v912_v17  ;;  %v880_v30 = vadd.f32 1.0, %v879_v45 }
 0x157   : > { %v1908_v12 = vpop.eup %1907  ;;  %v1030_v9 = vsel %vm518_vm10, %v2352_v49, %v998_v58  ;;  %v848_v48 = vsel %vm847_vm14, %v845_v60, %v842_v56  ;;  %v882_v57 = vand.u32 2147483647, %v2534_v22  ;;  %v915_v18 = vmul.f32 -0.5, %v2605_v55 }
 0x158   : > { %1613 = vmatmul.mubr.f32.gmra.mrb[6].mxu1 %v1030_v9  ;;  %v1000_v53 = vadd.f32 %v848_v48, %v488_v8  ;;  %v860_v39 = vmul.f32 0.6931472, %v1908_v12  ;;  %v930_v33 = vadd.f32 1.0, %v2659_v50  ;;  %v490_v3 = vmax.f32 %v2390_v43, 0.0 }
 0x159   : > { %vm522_vm15 = vcmp.ne.f32.partialorder %v2390_v43, %v2390_v43  ;;  %vm865_vm0 = vcmp.lt.f32.partialorder %v864_v4, 0.0004427343  ;;  %v898_v27 = vadd.f32 1.0, %v897_v38  ;;  %v492_v34 = vmax.f32 %v2408_v15, 0.0 }
 0x15a   : > { %v1910_v19 = vpop.eup %1909  ;;  %v1032_v49 = vsel %vm520_vm13, %v2368_v10, %v1000_v53  ;;  %v866_v6 = vsel %vm865_vm0, %v863_v29, %v860_v39  ;;  %1915 = vlog2.f32 %v930_v33  ;;  %v881_v7 = vmul.f32 %v2534_v22, %v880_v30 }
 0x15b   : > { %1615 = vmatprep.mubr.f32.mxu1 %v1032_v49  ;;  %v1002_v13 = vadd.f32 %v866_v6, %v490_v3  ;;  %v878_v5 = vmul.f32 0.6931472, %v1910_v19  ;;  %v900_v51 = vand.u32 2147483647, %v2563_v28  ;;  %vm883_vm1 = vcmp.lt.f32.partialorder %v882_v57, 0.0004427343 }
 0x15c   : > { %v916_v46 = vadd.f32 1.0, %v915_v18  ;;  %v933_v52 = vmul.f32 -0.5, %v2659_v50  ;;  %v948_v8 = vadd.f32 1.0, %v2671_v21  ;;  %vm524_vm2 = vcmp.ne.f32.partialorder %v2408_v15, %v2408_v15 }
 0x15d   : > { %v1912_v45 = vpop.eup %1911  ;;  %v1034_v10 = vsel %vm522_vm15, %v2390_v43, %v1002_v13  ;;  %v884_v37 = vsel %vm883_vm1, %v881_v7, %v878_v5  ;;  %v899_v22 = vmul.f32 %v2563_v28, %v898_v27  ;;  %v918_v4 = vand.u32 2147483647, %v2605_v55 }
 0x15e   : > { %1616 = vmatmul.mubr.f32.gmra.mrb[8].mxu1 %v1034_v10  ;;  %v1004_v14 = vadd.f32 %v884_v37, %v492_v34  ;;  %v896_v25 = vmul.f32 0.6931472, %v1912_v45  ;;  %1917 = vlog2.f32 %v948_v8  ;;  %v494_v17 = vmax.f32 %v2435_v59, 0.0 }
 0x15f   : > { %vm526_vm3 = vcmp.ne.f32.partialorder %v2435_v59, %v2435_v59  ;;  %vm901_vm4 = vcmp.lt.f32.partialorder %v900_v51, 0.0004427343  ;;  %v966_v43 = vadd.f32 1.0, %v2691_v11  ;;  %v917_v28 = vmul.f32 %v2605_v55, %v916_v46 }
 0x160   : > { %v1914_v58 = vpop.eup %1913  ;;  %v1036_v56 = vsel %vm524_vm2, %v2408_v15, %v1004_v14  ;;  %v902_v60 = vsel %vm901_vm4, %v899_v22, %v896_v25  ;;  %v934_v38 = vadd.f32 1.0, %v933_v52  ;;  %v951_v9 = vmul.f32 -0.5, %v2671_v21 }
 0x161   : > { %1618 = vmatprep.mubr.f32.mxu1 %v1036_v56  ;;  %v1006_v29 = vadd.f32 %v902_v60, %v494_v17  ;;  %v914_v12 = vmul.f32 0.6931472, %v1914_v58  ;;  %1919 = vlog2.f32 %v966_v43  ;;  %v496_v48 = vmax.f32 %v2455_v54, 0.0 }
 0x162   : > { %vm919_vm5 = vcmp.lt.f32.partialorder %v918_v4, 0.0004427343  ;;  %v936_v30 = vand.u32 2147483647, %v2659_v50  ;;  %v813_v57 = vadd.f32 1.0, %v2452_v44  ;;  %vm528_vm6 = vcmp.ne.f32.partialorder %v2455_v54, %v2455_v54 }
 0x163   : > { %v1038_v15 = vsel %vm526_vm3, %v2435_v59, %v1006_v29  ;;  %v920_v55 = vsel %vm919_vm5, %v917_v28, %v914_v12  ;;  %v498_v53 = vmax.f32 %v2520_v31, 0.0  ;;  %vm530_vm7 = vcmp.ne.f32.partialorder %v2520_v31, %v2520_v31 }
 0x164   : > { %v1916_v39 = vpop.eup %1915  ;;  %1619 = vmatmul.mubr.f32.gmra.mrb[10].mxu1 %v1038_v15  ;;  %v1008_v18 = vadd.f32 %v920_v55, %v496_v48  ;;  %v969_v33 = vmul.f32 -0.5, %v2691_v11  ;;  %1921 = vlog2.f32 %v813_v57  ;;  %v935_v27 = vmul.f32 %v2659_v50, %v934_v38 }
 0x165   : > { %v932_v3 = vmul.f32 0.6931472, %v1916_v39  ;;  %v952_v19 = vadd.f32 1.0, %v951_v9  ;;  %v831_v59 = vadd.f32 1.0, %v2476_v36  ;;  %vm937_vm8 = vcmp.lt.f32.partialorder %v936_v30, 0.0004427343 }
 0x166   : > { %v1040_v49 = vsel %vm528_vm6, %v2455_v54, %v1008_v18  ;;  %v954_v6 = vand.u32 2147483647, %v2671_v21  ;;  %v816_v34 = vmul.f32 -0.5, %v2452_v44  ;;  %v500_v5 = vmax.f32 %v2546_v23, 0.0 }
 0x167   : > { %1621 = vmatprep.mubr.f32.mxu1 %v1040_v49  ;;  %v938_v13 = vsel %vm937_vm8, %v935_v27, %v932_v3  ;;  %vm532_vm9 = vcmp.ne.f32.partialorder %v2546_v23, %v2546_v23  ;;  %1923 = vlog2.f32 %v831_v59  ;;  %v502_v51 = vmax.f32 %v2595_v0, 0.0 }
 0x168   : > { %v1918_v7 = vpop.eup %1917  ;;  %v1010_v50 = vadd.f32 %v938_v13, %v498_v53  ;;  %v970_v46 = vadd.f32 1.0, %v969_v33  ;;  %v849_v54 = vadd.f32 1.0, %v2509_v26  ;;  %v953_v8 = vmul.f32 %v2671_v21, %v952_v19 }
 0x169   : > { %v950_v52 = vmul.f32 0.6931472, %v1918_v7  ;;  %v972_v45 = vand.u32 2147483647, %v2691_v11  ;;  %v834_v10 = vmul.f32 -0.5, %v2476_v36  ;;  %v817_v22 = vadd.f32 1.0, %v816_v34 }
 0x16a   : > { %v1042_v37 = vsel %vm530_vm7, %v2520_v31, %v1010_v50  ;;  %vm955_vm10 = vcmp.lt.f32.partialorder %v954_v6, 0.0004427343  ;;  %1925 = vlog2.f32 %v849_v54  ;;  %vm534_vm11 = vcmp.ne.f32.partialorder %v2595_v0, %v2595_v0 }
 0x16b   : > { %v1920_v14 = vpop.eup %1919  ;;  %1622 = vmatmul.mubr.f32.gmra.mrb[12].mxu1 %v1042_v37  ;;  %v956_v25 = vsel %vm955_vm10, %v953_v8, %v950_v52  ;;  %v852_v21 = vmul.f32 -0.5, %v2509_v26  ;;  %v867_v4 = vadd.f32 1.0, %v2531_v2  ;;  %v971_v58 = vmul.f32 %v2691_v11, %v970_v46 }
 0x16c   : > { %v1012_v17 = vadd.f32 %v956_v25, %v500_v5  ;;  %v968_v43 = vmul.f32 0.6931472, %v1920_v14  ;;  %v819_v56 = vand.u32 2147483647, %v2452_v44  ;;  %vm973_vm12 = vcmp.lt.f32.partialorder %v972_v45, 0.0004427343 }
 0x16d   : > { %v485_v31 = vmax.f32 %v2346_v35, 0.0  ;;  %v835_v60 = vadd.f32 1.0, %v834_v10  ;;  %1927 = vlog2.f32 %v867_v4  ;;  %v818_v12 = vmul.f32 %v2452_v44, %v817_v22 }
 0x16e   : > { %v1922_v28 = vpop.eup %1921  ;;  %v1044_v38 = vsel %vm532_vm9, %v2546_v23, %v1012_v17  ;;  %v974_v29 = vsel %vm973_vm12, %v971_v58, %v968_v43  ;;  %v885_v9 = vadd.f32 1.0, %v2556_v63  ;;  %v837_v30 = vand.u32 2147483647, %v2476_v36  ;;  %v2967_v58 = vld [vmem:[#allocation6_spill] sm:$0xff] }
 0x16f   : > { %1624 = vmatprep.mubr.f32.mxu1 %v1044_v38  ;;  %v1014_v11 = vadd.f32 %v974_v29, %v502_v51  ;;  %v815_v48 = vmul.f32 0.6931472, %v1922_v28  ;;  %v853_v57 = vadd.f32 1.0, %v852_v21  ;;  %vm517_vm13 = vcmp.ne.f32.partialorder %v2346_v35, %v2346_v35 }
 0x170   : > { %vm820_vm14 = vcmp.lt.f32.partialorder %v819_v56, 0.0004427343  ;;  %v870_v15 = vmul.f32 -0.5, %v2531_v2  ;;  %1929 = vlog2.f32 %v885_v9  ;;  %v836_v53 = vmul.f32 %v2476_v36, %v835_v60 }
 0x171   : > { %v1924_v55 = vpop.eup %1923  ;;  %v1046_v44 = vsel %vm534_vm11, %v2595_v0, %v1014_v11  ;;  %v821_v23 = vsel %vm820_vm14, %v818_v12, %v815_v48  ;;  %v903_v39 = vadd.f32 1.0, %v2584_v16  ;;  %v855_v3 = vand.u32 2147483647, %v2509_v26  ;;  %v2968_v11 = vld [vmem:[#allocation7_spill] sm:$0xff] }
 0x172   : > { %1625 = vmatmul.mubr.f32.gmra.mrb[14].mxu1 %v1046_v44  ;;  %v997_v18 = vadd.f32 %v821_v23, %v485_v31  ;;  %v833_v33 = vmul.f32 0.6931472, %v1924_v55  ;;  %v888_v27 = vmul.f32 -0.5, %v2556_v63  ;;  %vm519_vm15 = vcmp.ne.f32.partialorder %v2359_v1, %v2359_v1 }
 0x173   : > { %vm838_vm0 = vcmp.lt.f32.partialorder %v837_v30, 0.0004427343  ;;  %v854_v19 = vmul.f32 %v2509_v26, %v853_v57  ;;  %1931 = vlog2.f32 %v903_v39  ;;  %v871_v49 = vadd.f32 1.0, %v870_v15 }
 0x174   : > { %v1926_v0 = vpop.eup %1925  ;;  %v1029_v36 = vsel %vm517_vm13, %v2346_v35, %v997_v18  ;;  %v839_v59 = vsel %vm838_vm0, %v836_v53, %v833_v33  ;;  %v873_v6 = vand.u32 2147483647, %v2531_v2  ;;  %v906_v5 = vmul.f32 -0.5, %v2584_v16 }
 0x175   : > { %1668 = vmatprep.mubr.f32.mxu1 %v1029_v36  ;;  %v999_v34 = vadd.f32 %v839_v59, %v487_v41  ;;  %v851_v13 = vmul.f32 0.6931472, %v1926_v0  ;;  %v921_v26 = vadd.f32 1.0, %v2646_v62  ;;  %v489_v7 = vmax.f32 %v2384_v32, 0.0  ;;  %v2966_v41 = vld [vmem:[#allocation5_spill] sm:$0xff] }
 0x176   : > { %vm521_vm1 = vcmp.ne.f32.partialorder %v2384_v32, %v2384_v32  ;;  %vm856_vm2 = vcmp.lt.f32.partialorder %v855_v3, 0.0004427343  ;;  %v889_v35 = vadd.f32 1.0, %v888_v27  ;;  %v491_v54 = vmax.f32 %v2966_v41, 0.0  ;;  %v2969_v3 = vld [vmem:[#allocation8_spill] sm:$0xff] }
 0x177   : > { %v1928_v50 = vpop.eup %1927  ;;  %v1031_v51 = vsel %vm519_vm15, %v2359_v1, %v999_v34  ;;  %v857_v46 = vsel %vm856_vm2, %v854_v19, %v851_v13  ;;  %1933 = vlog2.f32 %v921_v26  ;;  %v872_v45 = vmul.f32 %v2531_v2, %v871_v49 }
 0x178   : > { %1669 = vmatmul.mubr.f32.vlgmr.msra.gmra.mrb[16].mxu1 %v1031_v51  ;;  %v1001_v52 = vadd.f32 %v857_v46, %v489_v7  ;;  %v869_v8 = vmul.f32 0.6931472, %v1928_v50  ;;  %v891_v10 = vand.u32 2147483647, %v2556_v63  ;;  %vm874_vm3 = vcmp.lt.f32.partialorder %v873_v6, 0.0004427343 }
 0x179   : > { %v907_v37 = vadd.f32 1.0, %v906_v5  ;;  %v924_v22 = vmul.f32 -0.5, %v2646_v62  ;;  %v939_v14 = vadd.f32 1.0, %v2667_v24  ;;  %vm523_vm4 = vcmp.ne.f32.partialorder %v2966_v41, %v2966_v41 }
 0x17a   : > { %v1930_v25 = vpop.eup %1929  ;;  %v1033_v1 = vsel %vm521_vm1, %v2384_v32, %v1001_v52  ;;  %v875_v21 = vsel %vm874_vm3, %v872_v45, %v869_v8  ;;  %v890_v2 = vmul.f32 %v2556_v63, %v889_v35  ;;  %v909_v43 = vand.u32 2147483647, %v2584_v16 }
 0x17b   : > { %1671 = vmatprep.mubr.f32.mxu1 %v1033_v1  ;;  %v1003_v4 = vadd.f32 %v875_v21, %v491_v54  ;;  %v887_v17 = vmul.f32 0.6931472, %v1930_v25  ;;  %1935 = vlog2.f32 %v939_v14  ;;  %v493_v56 = vmax.f32 %v2967_v58, 0.0 }
 0x17c   : > { %vm525_vm5 = vcmp.ne.f32.partialorder %v2967_v58, %v2967_v58  ;;  %vm892_vm6 = vcmp.lt.f32.partialorder %v891_v10, 0.0004427343  ;;  %v957_v32 = vadd.f32 1.0, %v2681_v20  ;;  %v908_v63 = vmul.f32 %v2584_v16, %v907_v37 }
 0x17d   : > { %v1932_v31 = vpop.eup %1931  ;;  %v1035_v60 = vsel %vm523_vm4, %v2966_v41, %v1003_v4  ;;  %v893_v28 = vsel %vm892_vm6, %v890_v2, %v887_v17  ;;  %v925_v38 = vadd.f32 1.0, %v924_v22  ;;  %v942_v9 = vmul.f32 -0.5, %v2667_v24 }
 0x17e   : > { %1672 = vmatmul.mubr.f32.gmra.mrb[18].mxu1 %v1035_v60  ;;  %v1005_v29 = vadd.f32 %v893_v28, %v493_v56  ;;  %v905_v12 = vmul.f32 0.6931472, %v1932_v31  ;;  %1937 = vlog2.f32 %v957_v32  ;;  %v495_v48 = vmax.f32 %v2968_v11, 0.0 }
 0x17f   : > { %vm910_vm7 = vcmp.lt.f32.partialorder %v909_v43, 0.0004427343  ;;  %v927_v30 = vand.u32 2147483647, %v2646_v62  ;;  %v975_v57 = vadd.f32 1.0, %v2695_v61  ;;  %v960_v23 = vmul.f32 -0.5, %v2681_v20 }
 0x180   : > { %v1037_v15 = vsel %vm525_vm5, %v2967_v58, %v1005_v29  ;;  %v911_v16 = vsel %vm910_vm7, %v908_v63, %v905_v12  ;;  %vm527_vm8 = vcmp.ne.f32.partialorder %v2968_v11, %v2968_v11  ;;  %v926_v39 = vmul.f32 %v2646_v62, %v925_v38 }
 0x181   : > { %v1934_v55 = vpop.eup %1933  ;;  %1674 = vmatprep.mubr.f32.mxu1 %v1037_v15  ;;  %v1007_v44 = vadd.f32 %v911_v16, %v495_v48  ;;  %1939 = vlog2.f32 %v975_v57  ;;  %v943_v18 = vadd.f32 1.0, %v942_v9  ;;  %v497_v27 = vmax.f32 %v2969_v3, 0.0 }
 0x182   : > { %v923_v53 = vmul.f32 0.6931472, %v1934_v55  ;;  %vm928_vm9 = vcmp.lt.f32.partialorder %v927_v30, 0.0004427343  ;;  %v945_v19 = vand.u32 2147483647, %v2667_v24  ;;  %vm529_vm10 = vcmp.ne.f32.partialorder %v2969_v3, %v2969_v3 }
 0x183   : > { %v1039_v33 = vsel %vm527_vm8, %v2968_v11, %v1007_v44  ;;  %v978_v36 = vmul.f32 -0.5, %v2695_v61  ;;  %v961_v6 = vadd.f32 1.0, %v960_v23  ;;  %v944_v62 = vmul.f32 %v2667_v24, %v943_v18 }
 0x184   : > { %1675 = vmatmul.mubr.f32.gmra.mrb[20].mxu1 %v1039_v33  ;;  %v929_v0 = vsel %vm928_vm9, %v926_v39, %v923_v53  ;;  %v963_v13 = vand.u32 2147483647, %v2681_v20  ;;  %v499_v26 = vmax.f32 %v2528_v40, 0.0  ;;  %vm946_vm11 = vcmp.lt.f32.partialorder %v945_v19, 0.0004427343 }
 0x185   : > { %v1936_v59 = vpop.eup %1935  ;;  %v1009_v49 = vadd.f32 %v929_v0, %v497_v27  ;;  %v979_v50 = vadd.f32 1.0, %v978_v36  ;;  %v962_v41 = vmul.f32 %v2681_v20, %v961_v6  ;;  %v981_v54 = vand.u32 2147483647, %v2695_v61 }
 0x186   : > { %v941_v34 = vmul.f32 0.6931472, %v1936_v59  ;;  %vm531_vm12 = vcmp.ne.f32.partialorder %v2528_v40, %v2528_v40  ;;  %v501_v24 = vmax.f32 %v2581_v42, 0.0  ;;  %vm964_vm13 = vcmp.lt.f32.partialorder %v963_v13, 0.0004427343 }
 0x187   : > { %v1041_v5 = vsel %vm529_vm10, %v2969_v3, %v1009_v49  ;;  %v980_v22 = vmul.f32 %v2695_v61, %v979_v50  ;;  %vm533_vm14 = vcmp.ne.f32.partialorder %v2581_v42, %v2581_v42  ;;  %v503_v20 = vmax.f32 %v2602_v47, 0.0 }
 0x188   : > { %v1938_v7 = vpop.eup %1937  ;;  %1677 = vmatprep.mubr.f32.mxu1 %v1041_v5  ;;  %v947_v35 = vsel %vm946_vm11, %v944_v62, %v941_v34  ;;  %vm982_vm15 = vcmp.lt.f32.partialorder %v981_v54, 0.0004427343  ;;  %vm535_vm0 = vcmp.ne.f32.partialorder %v2602_v47, %v2602_v47 }
 0x189   : > { %v1011_v51 = vadd.f32 %v947_v35, %v499_v26  ;;  %v959_v46 = vmul.f32 0.6931472, %v1938_v7 }
 0x18b   : > { %v1940_v52 = vpop.eup %1939  ;;  %v1043_v8 = vsel %vm531_vm12, %v2528_v40, %v1011_v51  ;;  %v965_v45 = vsel %vm964_vm13, %v962_v41, %v959_v46 }
 0x18c   : > { %1678 = vmatmul.mubr.f32.gmra.mrb[22].mxu1 %v1043_v8  ;;  %v1013_v10 = vadd.f32 %v965_v45, %v501_v24  ;;  %v977_v37 = vmul.f32 0.6931472, %v1940_v52 }
 0x18e   : > { %v1045_v14 = vsel %vm533_vm14, %v2581_v42, %v1013_v10  ;;  %v983_v25 = vsel %vm982_vm15, %v980_v22, %v977_v37 }
 0x18f   : > { %1680 = vmatprep.mubr.f32.mxu1 %v1045_v14  ;;  %v1015_v1 = vadd.f32 %v983_v25, %v503_v20 }
 0x191   : > { %v1047_v40 = vsel %vm535_vm0, %v2602_v47, %v1015_v1 }
 0x192   : > { %1681 = vmatmul.mubr.f32.gmra.mrb[24].mxu1 %v1047_v40 }
 0x1f6   : > { %v1605_v21 = vpop.f32.mrb[0].mxu1 }
 0x1f7   : > { %v1130_v61 = vpop.f32.mrb[1].mxu1 }
 0x1fc   : > { %v1661_v2 = vpop.f32.mrb[32].mxu0 }
 0x1fd   : > { %v1371_v4 = vmul.f32 %v1661_v2, %v1605_v21  ;;  %v1291_v17 = vpop.f32.mrb[33].mxu0 }
 0x1fe   : > { %v1370_v43 = vmul.f32 %v1291_v17, %v1130_v61 }
 0x1ff   : > { %1387 = vst [vmem:[%s2866_s14 + $0x8] sm:$0xff] %v1371_v4 }
 0x200   : > { %1386 = vst [vmem:[%s2866_s14] sm:$0xff] %v1370_v43 }
 0x20e   : > { %v1608_v42 = vpop.f32.mrb[2].mxu1 }
 0x20f   : > { %v1140_v47 = vpop.f32.mrb[3].mxu1 }
 0x211   : > { %v1664_v58 = vpop.f32.mrb[34].mxu0 }
 0x212   : > { %v1373_v56 = vmul.f32 %v1664_v58, %v1608_v42  ;;  %v1301_v32 = vpop.f32.mrb[35].mxu0 }
 0x213   : > { %v1372_v31 = vmul.f32 %v1301_v32, %v1140_v47 }
 0x214   : > { %1389 = vst [vmem:[%s2866_s14 + $0x18] sm:$0xff] %v1373_v56 }
 0x215   : > { %1388 = vst [vmem:[%s2866_s14 + $0x10] sm:$0xff] %v1372_v31 }
 0x21f   : > { %v1611_v60 = vpop.f32.mrb[4].mxu1 }
 0x220   : > { %v1150_v28 = vpop.f32.mrb[5].mxu1 }
 0x225   : > { %v1667_v63 = vpop.f32.mrb[36].mxu0 }
 0x226   : > { %v1375_v38 = vmul.f32 %v1667_v63, %v1611_v60  ;;  %v1311_v29 = vpop.f32.mrb[37].mxu0 }
 0x227   : > { %v1374_v12 = vmul.f32 %v1311_v29, %v1150_v28 }
 0x228   : > { %1391 = vst [vmem:[%s2866_s14 + $0x28] sm:$0xff] %v1375_v38 }
 0x229   : > { %1390 = vst [vmem:[%s2866_s14 + $0x20] sm:$0xff] %v1374_v12 }
 0x22b   : > { %v1614_v9 = vpop.f32.mrb[6].mxu1 }
 0x22c   : > { %v1160_v11 = vpop.f32.mrb[7].mxu1 }
 0x231   : > { %v1617_v48 = vpop.f32.mrb[8].mxu1 }
 0x232   : > { %v1170_v30 = vpop.f32.mrb[9].mxu1 }
 0x237   : > { %v1620_v57 = vpop.f32.mrb[10].mxu1 }
 0x238   : > { %v1180_v15 = vpop.f32.mrb[11].mxu1 }
 0x23e   : > { %v1623_v16 = vpop.f32.mrb[12].mxu1 }
 0x23f   : > { %v1190_v55 = vpop.f32.mrb[13].mxu1 }
 0x245   : > { %v1626_v44 = vpop.f32.mrb[14].mxu1 }
 0x246   : > { %v1200_v23 = vpop.f32.mrb[15].mxu1 }
 0x24b   : > { %v1670_v53 = vpop.f32.mrb[16].mxu1 }
 0x24c   : > { %v1377_v39 = vmul.f32 %v1670_v53, %v1614_v9  ;;  %v1321_v18 = vpop.f32.mrb[17].mxu1 }
 0x24d   : > { %v1376_v33 = vmul.f32 %v1321_v18, %v1160_v11 }
 0x24e   : > { %1393 = vst [vmem:[%s2866_s14 + $0x38] sm:$0xff] %v1377_v39 }
 0x24f   : > { %1392 = vst [vmem:[%s2866_s14 + $0x30] sm:$0xff] %v1376_v33 }
 0x251   : > { %v1673_v3 = vpop.f32.mrb[18].mxu1 }
 0x252   : > { %v1379_v27 = vmul.f32 %v1673_v3, %v1617_v48  ;;  %v1331_v19 = vpop.f32.mrb[19].mxu1 }
 0x253   : > { %v1378_v0 = vmul.f32 %v1331_v19, %v1170_v30 }
 0x254   : > { %1395 = vst [vmem:[%s2866_s14 + $0x48] sm:$0xff] %v1379_v27 }
 0x255   : > { %1394 = vst [vmem:[%s2866_s14 + $0x40] sm:$0xff] %v1378_v0 }
 0x257   : > { %v1676_v36 = vpop.f32.mrb[20].mxu1 }
 0x258   : > { %v1381_v59 = vmul.f32 %v1676_v36, %v1620_v57  ;;  %v1341_v49 = vpop.f32.mrb[21].mxu1 }
 0x259   : > { %v1380_v6 = vmul.f32 %v1341_v49, %v1180_v15 }
 0x25a   : > { %1397 = vst [vmem:[%s2866_s14 + $0x58] sm:$0xff] %v1381_v59 }
 0x25b   : > { %1396 = vst [vmem:[%s2866_s14 + $0x50] sm:$0xff] %v1380_v6 }
 0x25f   : > { %v1679_v34 = vpop.f32.mrb[22].mxu1 }
 0x260   : > { %v1383_v62 = vmul.f32 %v1679_v34, %v1623_v16  ;;  %v1351_v13 = vpop.f32.mrb[23].mxu1 }
 0x261   : > { %v1382_v5 = vmul.f32 %v1351_v13, %v1190_v55 }
 0x262   : > { %1399 = vst [vmem:[%s2866_s14 + $0x68] sm:$0xff] %v1383_v62 }
 0x263   : > { %1398 = vst [vmem:[%s2866_s14 + $0x60] sm:$0xff] %v1382_v5 }
 0x265   : > { %v1682_v26 = vpop.f32.mrb[24].mxu1 }
 0x266   : > { %v1385_v7 = vmul.f32 %v1682_v26, %v1626_v44  ;;  %v1361_v35 = vpop.f32.mrb[25].mxu1 }
 0x267   : > { %v1384_v50 = vmul.f32 %v1361_v35, %v1200_v23 }
 0x268   : > { %1401 = vst [vmem:[%s2866_s14 + $0x78] sm:$0xff] %v1385_v7 }
 0x269   : > { %1400 = vst [vmem:[%s2866_s14 + $0x70] sm:$0xff] %v1384_v50 }
 0x26a   : > { %1954 = shalt.err (!%p1951_p3)
}
 0x26b   : > { %s1955_s8 = scalar_lea.hbm %s2887_s25, 2048  ;;  %s1959_s11 = scalar_lea.hbm %s2941_s5, 4096 }
 0x26c   : > { %p1956_p4 = scmp.ne.s32.totalorder %s2887_s25, %s1955_s8  ;;  %p1960_p9 = scmp.lt.u32.totalorder %s2887_s25, %s2941_s5 }
 0x26d   : > { %p1961_p10 = scmp.lt.u32.totalorder %s1959_s11, %s1955_s8  ;;  %p1963_p12 = scmp.lt.u32.totalorder %s1955_s8, %s2887_s25 }
 0x26e   : > { %p1957_p7 = pnand %p1956_p4, %p2077_p5 }
 0x26f   : > { %p1962_p11 = por %p1961_p10, %p1960_p9 }
 0x270   : > { %p1958_p8 = pneg %p1957_p7 }
 0x271   : > { %p1964_p13 = por %p1963_p12, %p1962_p11 }
 0x273   : > { %p1965_p0 = pnand %p1964_p13, %p1958_p8 }
 0x275   : > { %1968 = shalt.err (!%p1965_p0)
}
 0x276   : > { %s2007_s14 = smov 128   ;;  %s2008_s15 = smov 8  }
 0x277   : > { %1771 = dma.vmem_to_hbm [thread:$0]  (%p2077_p5), %s2889_s16, 2048, %s2887_s25, %s2895_s26, %s2007_s14, %s2007_s14, %s2008_s15  }
 0x278 PF: > { %p1777_p1 = scmp.ge.s32.totalorder %s2003_s21, 2  ;;  %s1431_s17 = sand.u32 1, %s1991_s18  }
 0x279   : > { %s1432_s23 = scalar_lea.sflag [#allocation3], %s1431_s17 }
 0x27a   : > { %p1774_p2 = pnand %p1777_p1, %p2081_p6 }
 0x27c   : > { %1986 = dma.done.wait (!%p1774_p2), %s1432_s23, 2048  }
 0x27d   : > { %1988 = vsyncadd (!%p1774_p2), %s1432_s23, 4294965248  ;;  %p15_p3 = scmp.ge.s32.totalorder %s2064_s24, 4   ;;  %s2970_s18 = smov %s1995_s19 }
 0x27e   : > { %s2971_s19 = smov %s1999_s20  ;;  %s2972_s20 = smov %s2075_s27 }
 0x27f   : > { %s2973_s21 = smov %s2064_s24  ;;  %17 = sbr.rel (!%p15_p3) target bundleno = 3 (0x3), region = 75 }
 0x286   :  { %1437 = vsyncpa [#allocation3], 1 }
 0x287   :  { %1439 = vsyncpa [#allocation3 + $0x1], 1 }

</bundles_post_ra>
